<compile_context>
chip_gen: v7x
topology: tpu7x:2x2x1
jax: 0.10.0
libtpu: 0.0.40
codegen_flags: <defaults>
</compile_context>

<pallas_src>
import functools

import jax
import jax.numpy as jnp
import numpy as np
from jax.experimental import pallas as pl
from jax.experimental.pallas import tpu as pltpu

EPS = 1e-6  # GeMFreq eps


def _atthead_kernel(p_ref, x_ref, w1_ref, b1_ref, wa_ref, ba_ref, wf_ref, bf_ref,
                    logits_ref, clip_ref, fs_ref, ta_ref):
    """One grid step == one batch sample; everything for that sample is in VMEM.

    p_ref:          (1,)           f32, SMEM   GeM exponent
    x_ref:          (1, F, Tc, C)  f32         center-cropped input, channels last
    w1_ref:         (C, HID)       bf16        Linear(in_chans, 512) weight
    wa_ref/wf_ref:  (HID, NC)      bf16        attention / fix_scale 1x1-conv weights
    b1/ba/bf:       (1, HID)/(1, NC) f32       biases
    outputs:        logits/clip (1, 1, NC), fs/ta (1, Tc, NC) blocks, f32
    """
    p = p_ref[0]
    inv_p = 1.0 / p

    # ---- GeMFreq: (mean_F clamp(x, eps)^p)^(1/p) ----
    xc = jnp.maximum(x_ref[0], EPS)                 # (F, Tc, C)
    xp = jnp.exp(p * jnp.log(xc))                   # x^p via EUP exp/log (x > 0 after clamp)
    pooled = jnp.mean(xp, axis=0)                   # (Tc, C)
    pooled = jnp.exp(jnp.log(pooled) * inv_p)       # ^(1/p)

    # ---- dense_layers (Dropout == identity in eval): Linear(C, 512) + ReLU ----
    hidden = jnp.dot(pooled.astype(jnp.bfloat16), w1_ref[...],
                     preferred_element_type=jnp.float32) + b1_ref[...]
    hidden = jnp.maximum(hidden, 0.0)               # (Tc, HID)
    hidden_bf = hidden.astype(jnp.bfloat16)

    # ---- attention / fix_scale Conv1d(k=1) == per-frame matmuls (bf16 in, f32 acc) ----
    ta = jnp.tanh(jnp.dot(hidden_bf, wa_ref[...],
                          preferred_element_type=jnp.float32) + ba_ref[...])   # (Tc, NC)
    fs = jnp.dot(hidden_bf, wf_ref[...],
                 preferred_element_type=jnp.float32) + bf_ref[...]             # (Tc, NC)

    # ---- softmax over the cropped time window + attention-weighted sums ----
    m = jnp.max(ta, axis=0, keepdims=True)
    e = jnp.exp(ta - m)
    att = e / jnp.sum(e, axis=0, keepdims=True)     # exact divide: sum_t att == 1

    logits_ref[0] = jnp.sum(fs * att, axis=0, keepdims=True)                  # (1, NC)
    clip_ref[0] = jnp.sum(jax.nn.sigmoid(fs) * att, axis=0, keepdims=True)    # (1, NC)
    fs_ref[0] = fs
    ta_ref[0] = ta


def pack_att_head_params(params):
    """One-time weight packing (hoisted out of the per-call forward path):
    bf16 MXU weights, f32 biases / GeM exponent. Call once, reuse every step."""
    return {
        "p": params["p"].reshape(1).astype(jnp.float32),
        "w1": params["w1"].astype(jnp.bfloat16),                  # (C, 512)
        "b1": params["b1"].reshape(1, -1).astype(jnp.float32),    # (1, 512)
        "wa": params["wa"].astype(jnp.bfloat16),                  # (512, NC)
        "ba": params["ba"].reshape(1, -1).astype(jnp.float32),    # (1, NC)
        "wf": params["wf"].astype(jnp.bfloat16),                  # (512, NC)
        "bf": params["bf"].reshape(1, -1).astype(jnp.float32),    # (1, NC)
    }


@functools.partial(jax.jit, static_argnames=("train_period", "infer_period"))
def att_head_forward(x, packed, train_period=15.0, infer_period=5.0):
    """x: (B, C, F, T) float32; packed = pack_att_head_params(params).
    Returns (logits, clipwise_pred, fix_scale_feat, time_att), eval mode."""
    B, C, F, T = x.shape
    HID = packed["w1"].shape[1]
    NC = packed["wa"].shape[1]

    # eval-mode center-crop indices (matches the PyTorch int() arithmetic;
    # ratio == 1.0 degenerates to the full window, i.e. train_period == infer_period)
    ratio = infer_period / train_period
    start = int(T / 2 - T * ratio / 2)
    end = int(T / 2 - T * ratio / 2 + T * ratio)
    Tc = end - start

    # crop early (everything before the softmax is per-time-frame), channels last
    x_l = jnp.transpose(x[..., start:end], (0, 2, 3, 1))        # (B, F, Tc, C)

    def resident(shape):
        # whole-array weight block, constant index -> DMA'd once, stays in VMEM
        return pl.BlockSpec(shape, lambda b, _s=shape: (0,) * len(_s))

    in_specs = [
        pl.BlockSpec(memory_space=pltpu.MemorySpace.SMEM),        # p (scalar, SMEM)
        pl.BlockSpec((1, F, Tc, C), lambda b: (b, 0, 0, 0)),      # x: one sample / step
        resident((C, HID)),                                       # w1
        resident((1, HID)),                                       # b1
        resident((HID, NC)),                                      # wa
        resident((1, NC)),                                        # ba
        resident((HID, NC)),                                      # wf
        resident((1, NC)),                                        # bf
    ]
    out_specs = (
        pl.BlockSpec((1, 1, NC), lambda b: (b, 0, 0)),
        pl.BlockSpec((1, 1, NC), lambda b: (b, 0, 0)),
        pl.BlockSpec((1, Tc, NC), lambda b: (b, 0, 0)),
        pl.BlockSpec((1, Tc, NC), lambda b: (b, 0, 0)),
    )
    out_shape = (
        jax.ShapeDtypeStruct((B, 1, NC), jnp.float32),     # logits
        jax.ShapeDtypeStruct((B, 1, NC), jnp.float32),     # clipwise_pred
        jax.ShapeDtypeStruct((B, Tc, NC), jnp.float32),    # fix_scale(feat)  (B, T', NC)
        jax.ShapeDtypeStruct((B, Tc, NC), jnp.float32),    # time_att         (B, T', NC)
    )

    # For much larger F / B the GeM reduction could additionally be gridded over F
    # with a VMEM accumulator (pl.when init/finalize) to bound VMEM on v7x's 64 MiB;
    # at these shapes the whole per-sample block is a few tens of KiB.
    logits, clip, fs, ta = pl.pallas_call(
        _atthead_kernel,
        grid=(B,),
        in_specs=in_specs,
        out_specs=out_specs,
        out_shape=out_shape,
        compiler_params=pltpu.CompilerParams(
            dimension_semantics=("parallel",)),    # v7x: split the batch across both TCs
    )(packed["p"], x_l, packed["w1"], packed["b1"], packed["wa"], packed["ba"],
      packed["wf"], packed["bf"])

    return logits[:, 0, :], clip[:, 0, :], fs, ta


def att_head_reference(x, params, train_period=15.0, infer_period=5.0):
    """Pure-JAX f32 reference (eval mode), used only to validate the kernel."""
    p = params["p"][0]
    xc = jnp.maximum(x, EPS)
    pooled = jnp.mean(xc ** p, axis=2) ** (1.0 / p)              # (B, C, T)
    feat = jnp.transpose(pooled, (0, 2, 1))                      # (B, T, C)
    hidden = jax.nn.relu(feat @ params["w1"] + params["b1"])     # (B, T, 512)
    time_att = jnp.tanh(hidden @ params["wa"] + params["ba"])    # (B, T, NC)
    T = x.shape[-1]
    ratio = infer_period / train_period
    start = int(T / 2 - T * ratio / 2)
    end = int(T / 2 - T * ratio / 2 + T * ratio)
    hid_c, ta_c = hidden[:, start:end], time_att[:, start:end]
    att = jax.nn.softmax(ta_c, axis=1)
    fs = hid_c @ params["wf"] + params["bf"]
    logits = jnp.sum(fs * att, axis=1)
    clip = jnp.sum(jax.nn.sigmoid(fs) * att, axis=1)
    return logits, clip, fs, ta_c


if __name__ == "__main__":
    B, C, F, T = 2, 32, 16, 12     # batch, in_chans, freq bins, time frames
    HID, NC = 512, 264             # dense width (fixed by the module), num_class

    key = jax.random.PRNGKey(0)
    ks = jax.random.split(key, 8)
    x = jax.random.normal(ks[0], (B, C, F, T), jnp.float32)

    # Parameters in matmul orientation: PyTorch Linear / Conv1d(k=1) weights are
    # (out, in) / (out, in, 1); here they are kept as the transposed (in, out).
    params = {
        "p":  jnp.array([3.0], jnp.float32),                             # GeM p init
        "w1": jax.random.normal(ks[1], (C, HID), jnp.float32) * 0.05,    # Linear(C, 512)
        "b1": jax.random.normal(ks[2], (1, HID), jnp.float32) * 0.05,
        "wa": jax.random.normal(ks[3], (HID, NC), jnp.float32) * 0.05,   # attention conv1d k=1
        "ba": jax.random.normal(ks[4], (1, NC), jnp.float32) * 0.05,
        "wf": jax.random.normal(ks[5], (HID, NC), jnp.float32) * 0.05,   # fix_scale conv1d k=1
        "bf": jax.random.normal(ks[6], (1, NC), jnp.float32) * 0.05,
    }

    # One-time prep (hoisted out of the per-call path per the perf review).
    packed = jax.block_until_ready(pack_att_head_params(params))

    outs = att_head_forward(x, packed)
    outs = jax.block_until_ready(outs)

    refs = att_head_reference(x, params)
    # bf16 matmul weights (f32 accumulation) vs. the f32 reference -> ~1e-3 error.
    for o, r in zip(outs, refs):
        np.testing.assert_allclose(np.asarray(o), np.asarray(r), rtol=1e-2, atol=1e-2)

    print("KERNEL_OK")
</pallas_src>

<mosaic_0001>
module attributes {stable_mosaic.version = 11 : i64} {
  func.func @_atthead_kernel(%arg0: i32, %arg1: memref<1xf32, #tpu.memory_space<smem>>, %arg2: memref<1x16x4x32xf32, #tpu.memory_space<vmem>>, %arg3: memref<32x512xbf16, #tpu.memory_space<vmem>>, %arg4: memref<1x512xf32, #tpu.memory_space<vmem>>, %arg5: memref<512x264xbf16, #tpu.memory_space<vmem>>, %arg6: memref<1x264xf32, #tpu.memory_space<vmem>>, %arg7: memref<512x264xbf16, #tpu.memory_space<vmem>>, %arg8: memref<1x264xf32, #tpu.memory_space<vmem>>, %arg9: memref<1x1x264xf32, #tpu.memory_space<vmem>>, %arg10: memref<1x1x264xf32, #tpu.memory_space<vmem>>, %arg11: memref<1x4x264xf32, #tpu.memory_space<vmem>>, %arg12: memref<1x4x264xf32, #tpu.memory_space<vmem>>) attributes {dimension_semantics = [#tpu.dimension_semantics<parallel>], iteration_bounds = array<i64: 2>, scalar_prefetch = 0 : i64, scratch_operands = 0 : i64, tpu.core_type = #tpu.core_type<tc>, window_params = [{transform_indices = @transform_0, window_bounds = array<i64: 1>}, {transform_indices = @transform_1, window_bounds = array<i64: 1, 16, 4, 32>}, {pipeline_mode = #tpu.pipeline_mode<synchronous>, transform_indices = @transform_2, window_bounds = array<i64: 32, 512>}, {pipeline_mode = #tpu.pipeline_mode<synchronous>, transform_indices = @transform_3, window_bounds = array<i64: 1, 512>}, {pipeline_mode = #tpu.pipeline_mode<synchronous>, transform_indices = @transform_4, window_bounds = array<i64: 512, 264>}, {pipeline_mode = #tpu.pipeline_mode<synchronous>, transform_indices = @transform_5, window_bounds = array<i64: 1, 264>}, {pipeline_mode = #tpu.pipeline_mode<synchronous>, transform_indices = @transform_6, window_bounds = array<i64: 512, 264>}, {pipeline_mode = #tpu.pipeline_mode<synchronous>, transform_indices = @transform_7, window_bounds = array<i64: 1, 264>}, {transform_indices = @transform_8, window_bounds = array<i64: 1, 1, 264>}, {transform_indices = @transform_9, window_bounds = array<i64: 1, 1, 264>}, {transform_indices = @transform_10, window_bounds = array<i64: 1, 4, 264>}, {transform_indices = @transform_11, window_bounds = array<i64: 1, 4, 264>}]} {
    %c0 = arith.constant 0 : index
    %0 = memref.load %arg1[%c0] : memref<1xf32, #tpu.memory_space<smem>>
    %cst = arith.constant 1.000000e+00 : f32
    %1 = arith.divf %cst, %0 : f32
    %c0_0 = arith.constant 0 : index
    %c0_1 = arith.constant 0 : index
    %c0_2 = arith.constant 0 : index
    %c0_3 = arith.constant 0 : index
    %2 = vector.load %arg2[%c0_0, %c0_1, %c0_2, %c0_3] : memref<1x16x4x32xf32, #tpu.memory_space<vmem>>, vector<1x16x4x32xf32>
    %3 = vector.shape_cast %2 : vector<1x16x4x32xf32> to vector<16x4x32xf32>
    %cst_4 = arith.constant 9.99999997E-7 : f32
    %4 = vector.broadcast %cst_4 : f32 to vector<16x4x32xf32>
    %5 = arith.maximumf %3, %4 : vector<16x4x32xf32>
    %6 = math.log %5 : vector<16x4x32xf32>
    %7 = vector.broadcast %0 : f32 to vector<16x4x32xf32>
    %8 = arith.mulf %7, %6 : vector<16x4x32xf32>
    %9 = math.exp %8 : vector<16x4x32xf32>
    %cst_5 = arith.constant dense<0.000000e+00> : vector<4x32xf32>
    %10 = vector.multi_reduction <add>, %9, %cst_5 [0] : vector<16x4x32xf32> to vector<4x32xf32>
    %cst_6 = arith.constant 1.600000e+01 : f32
    %11 = vector.broadcast %cst_6 : f32 to vector<4x32xf32>
    %12 = arith.divf %10, %11 : vector<4x32xf32>
    %13 = math.log %12 : vector<4x32xf32>
    %14 = vector.broadcast %1 : f32 to vector<4x32xf32>
    %15 = arith.mulf %13, %14 : vector<4x32xf32>
    %16 = math.exp %15 : vector<4x32xf32>
    %17 = arith.truncf %16 : vector<4x32xf32> to vector<4x32xbf16>
    %c0_7 = arith.constant 0 : index
    %c0_8 = arith.constant 0 : index
    %18 = vector.load %arg3[%c0_7, %c0_8] : memref<32x512xbf16, #tpu.memory_space<vmem>>, vector<32x512xbf16>
    %cst_9 = arith.constant dense<0.000000e+00> : vector<4x512xf32>
    %19 = tpu.matmul %17, %18, %cst_9 {dimension_numbers = #tpu.dot_dimension_numbers<[1], [0], [0], [1], [0, 0, 1, 1], [], []>} : vector<4x32xbf16>, vector<32x512xbf16>, vector<4x512xf32> -> vector<4x512xf32>
    %c0_10 = arith.constant 0 : index
    %c0_11 = arith.constant 0 : index
    %20 = vector.load %arg4[%c0_10, %c0_11] : memref<1x512xf32, #tpu.memory_space<vmem>>, vector<1x512xf32>
    %21 = vector.broadcast %20 : vector<1x512xf32> to vector<4x512xf32>
    %22 = arith.addf %19, %21 : vector<4x512xf32>
    %cst_12 = arith.constant 0.000000e+00 : f32
    %23 = vector.broadcast %cst_12 : f32 to vector<4x512xf32>
    %24 = arith.maximumf %22, %23 : vector<4x512xf32>
    %25 = arith.truncf %24 : vector<4x512xf32> to vector<4x512xbf16>
    %c0_13 = arith.constant 0 : index
    %c0_14 = arith.constant 0 : index
    %26 = vector.load %arg5[%c0_13, %c0_14] : memref<512x264xbf16, #tpu.memory_space<vmem>>, vector<512x264xbf16>
    %cst_15 = arith.constant dense<0.000000e+00> : vector<4x264xf32>
    %27 = tpu.matmul %25, %26, %cst_15 {dimension_numbers = #tpu.dot_dimension_numbers<[1], [0], [0], [1], [0, 0, 1, 1], [], []>} : vector<4x512xbf16>, vector<512x264xbf16>, vector<4x264xf32> -> vector<4x264xf32>
    %c0_16 = arith.constant 0 : index
    %c0_17 = arith.constant 0 : index
    %28 = vector.load %arg6[%c0_16, %c0_17] : memref<1x264xf32, #tpu.memory_space<vmem>>, vector<1x264xf32>
    %29 = vector.broadcast %28 : vector<1x264xf32> to vector<4x264xf32>
    %30 = arith.addf %27, %29 : vector<4x264xf32>
    %31 = math.tanh %30 : vector<4x264xf32>
    %c0_18 = arith.constant 0 : index
    %c0_19 = arith.constant 0 : index
    %32 = vector.load %arg7[%c0_18, %c0_19] : memref<512x264xbf16, #tpu.memory_space<vmem>>, vector<512x264xbf16>
    %cst_20 = arith.constant dense<0.000000e+00> : vector<4x264xf32>
    %33 = tpu.matmul %25, %32, %cst_20 {dimension_numbers = #tpu.dot_dimension_numbers<[1], [0], [0], [1], [0, 0, 1, 1], [], []>} : vector<4x512xbf16>, vector<512x264xbf16>, vector<4x264xf32> -> vector<4x264xf32>
    %c0_21 = arith.constant 0 : index
    %c0_22 = arith.constant 0 : index
    %34 = vector.load %arg8[%c0_21, %c0_22] : memref<1x264xf32, #tpu.memory_space<vmem>>, vector<1x264xf32>
    %35 = vector.broadcast %34 : vector<1x264xf32> to vector<4x264xf32>
    %36 = arith.addf %33, %35 : vector<4x264xf32>
    %cst_23 = arith.constant dense<0xFF800000> : vector<264xf32>
    %37 = vector.multi_reduction <maximumf>, %31, %cst_23 [0] : vector<4x264xf32> to vector<264xf32>
    %38 = vector.shape_cast %37 : vector<264xf32> to vector<1x264xf32>
    %39 = vector.broadcast %38 : vector<1x264xf32> to vector<4x264xf32>
    %40 = arith.subf %31, %39 : vector<4x264xf32>
    %41 = math.exp %40 : vector<4x264xf32>
    %cst_24 = arith.constant dense<0.000000e+00> : vector<264xf32>
    %42 = vector.multi_reduction <add>, %41, %cst_24 [0] : vector<4x264xf32> to vector<264xf32>
    %43 = vector.shape_cast %42 : vector<264xf32> to vector<1x264xf32>
    %44 = vector.broadcast %43 : vector<1x264xf32> to vector<4x264xf32>
    %45 = arith.divf %41, %44 : vector<4x264xf32>
    %46 = arith.mulf %36, %45 : vector<4x264xf32>
    %cst_25 = arith.constant dense<0.000000e+00> : vector<264xf32>
    %47 = vector.multi_reduction <add>, %46, %cst_25 [0] : vector<4x264xf32> to vector<264xf32>
    %48 = vector.shape_cast %47 : vector<264xf32> to vector<1x264xf32>
    %c0_26 = arith.constant 0 : index
    %c0_27 = arith.constant 0 : index
    %c0_28 = arith.constant 0 : index
    %49 = vector.load %arg9[%c0_26, %c0_27, %c0_28] : memref<1x1x264xf32, #tpu.memory_space<vmem>>, vector<1x1x264xf32>
    %50 = vector.shape_cast %49 : vector<1x1x264xf32> to vector<1x264xf32>
    %51 = vector.shape_cast %48 : vector<1x264xf32> to vector<1x1x264xf32>
    tpu.vector_store %arg9[%c0_26, %c0_27, %c0_28], %51 {strides = array<i32>} : memref<1x1x264xf32, #tpu.memory_space<vmem>>, vector<1x1x264xf32>,
    %52 = arith.negf %36 : vector<4x264xf32>
    %53 = math.exp %52 : vector<4x264xf32>
    %cst_29 = arith.constant 1.000000e+00 : f32
    %54 = vector.broadcast %cst_29 : f32 to vector<4x264xf32>
    %55 = arith.addf %54, %53 : vector<4x264xf32>
    %56 = arith.divf %54, %55 : vector<4x264xf32>
    %57 = arith.mulf %56, %45 : vector<4x264xf32>
    %cst_30 = arith.constant dense<0.000000e+00> : vector<264xf32>
    %58 = vector.multi_reduction <add>, %57, %cst_30 [0] : vector<4x264xf32> to vector<264xf32>
    %59 = vector.shape_cast %58 : vector<264xf32> to vector<1x264xf32>
    %c0_31 = arith.constant 0 : index
    %c0_32 = arith.constant 0 : index
    %c0_33 = arith.constant 0 : index
    %60 = vector.load %arg10[%c0_31, %c0_32, %c0_33] : memref<1x1x264xf32, #tpu.memory_space<vmem>>, vector<1x1x264xf32>
    %61 = vector.shape_cast %60 : vector<1x1x264xf32> to vector<1x264xf32>
    %62 = vector.shape_cast %59 : vector<1x264xf32> to vector<1x1x264xf32>
    tpu.vector_store %arg10[%c0_31, %c0_32, %c0_33], %62 {strides = array<i32>} : memref<1x1x264xf32, #tpu.memory_space<vmem>>, vector<1x1x264xf32>,
    %c0_34 = arith.constant 0 : index
    %c0_35 = arith.constant 0 : index
    %c0_36 = arith.constant 0 : index
    %63 = vector.load %arg11[%c0_34, %c0_35, %c0_36] : memref<1x4x264xf32, #tpu.memory_space<vmem>>, vector<1x4x264xf32>
    %64 = vector.shape_cast %63 : vector<1x4x264xf32> to vector<4x264xf32>
    %65 = vector.shape_cast %36 : vector<4x264xf32> to vector<1x4x264xf32>
    tpu.vector_store %arg11[%c0_34, %c0_35, %c0_36], %65 {strides = array<i32>} : memref<1x4x264xf32, #tpu.memory_space<vmem>>, vector<1x4x264xf32>,
    %c0_37 = arith.constant 0 : index
    %c0_38 = arith.constant 0 : index
    %c0_39 = arith.constant 0 : index
    %66 = vector.load %arg12[%c0_37, %c0_38, %c0_39] : memref<1x4x264xf32, #tpu.memory_space<vmem>>, vector<1x4x264xf32>
    %67 = vector.shape_cast %66 : vector<1x4x264xf32> to vector<4x264xf32>
    %68 = vector.shape_cast %31 : vector<4x264xf32> to vector<1x4x264xf32>
    tpu.vector_store %arg12[%c0_37, %c0_38, %c0_39], %68 {strides = array<i32>} : memref<1x4x264xf32, #tpu.memory_space<vmem>>, vector<1x4x264xf32>,
    return
  }
  func.func @transform_0(%arg0: i32) -> i32 {
    %c0_i32 = arith.constant 0 : i32
    %c0_i32_0 = arith.constant 0 : i32
    return %c0_i32 : i32
  }
  func.func @transform_1(%arg0: i32) -> (i32, i32, i32, i32) {
    %c0_i32 = arith.constant 0 : i32
    %c0_i32_0 = arith.constant 0 : i32
    %c0_i32_1 = arith.constant 0 : i32
    %c0_i32_2 = arith.constant 0 : i32
    return %arg0, %c0_i32, %c0_i32_0, %c0_i32_1 : i32, i32, i32, i32
  }
  func.func @transform_2(%arg0: i32) -> (i32, i32) {
    %c0_i32 = arith.constant 0 : i32
    %c0_i32_0 = arith.constant 0 : i32
    %c0_i32_1 = arith.constant 0 : i32
    return %c0_i32, %c0_i32_0 : i32, i32
  }
  func.func @transform_3(%arg0: i32) -> (i32, i32) {
    %c0_i32 = arith.constant 0 : i32
    %c0_i32_0 = arith.constant 0 : i32
    %c0_i32_1 = arith.constant 0 : i32
    return %c0_i32, %c0_i32_0 : i32, i32
  }
  func.func @transform_4(%arg0: i32) -> (i32, i32) {
    %c0_i32 = arith.constant 0 : i32
    %c0_i32_0 = arith.constant 0 : i32
    %c0_i32_1 = arith.constant 0 : i32
    return %c0_i32, %c0_i32_0 : i32, i32
  }
  func.func @transform_5(%arg0: i32) -> (i32, i32) {
    %c0_i32 = arith.constant 0 : i32
    %c0_i32_0 = arith.constant 0 : i32
    %c0_i32_1 = arith.constant 0 : i32
    return %c0_i32, %c0_i32_0 : i32, i32
  }
  func.func @transform_6(%arg0: i32) -> (i32, i32) {
    %c0_i32 = arith.constant 0 : i32
    %c0_i32_0 = arith.constant 0 : i32
    %c0_i32_1 = arith.constant 0 : i32
    return %c0_i32, %c0_i32_0 : i32, i32
  }
  func.func @transform_7(%arg0: i32) -> (i32, i32) {
    %c0_i32 = arith.constant 0 : i32
    %c0_i32_0 = arith.constant 0 : i32
    %c0_i32_1 = arith.constant 0 : i32
    return %c0_i32, %c0_i32_0 : i32, i32
  }
  func.func @transform_8(%arg0: i32) -> (i32, i32, i32) {
    %c0_i32 = arith.constant 0 : i32
    %c0_i32_0 = arith.constant 0 : i32
    %c0_i32_1 = arith.constant 0 : i32
    return %arg0, %c0_i32, %c0_i32_0 : i32, i32, i32
  }
  func.func @transform_9(%arg0: i32) -> (i32, i32, i32) {
    %c0_i32 = arith.constant 0 : i32
    %c0_i32_0 = arith.constant 0 : i32
    %c0_i32_1 = arith.constant 0 : i32
    return %arg0, %c0_i32, %c0_i32_0 : i32, i32, i32
  }
  func.func @transform_10(%arg0: i32) -> (i32, i32, i32) {
    %c0_i32 = arith.constant 0 : i32
    %c0_i32_0 = arith.constant 0 : i32
    %c0_i32_1 = arith.constant 0 : i32
    return %arg0, %c0_i32, %c0_i32_0 : i32, i32, i32
  }
  func.func @transform_11(%arg0: i32) -> (i32, i32, i32) {
    %c0_i32 = arith.constant 0 : i32
    %c0_i32_0 = arith.constant 0 : i32
    %c0_i32_1 = arith.constant 0 : i32
    return %arg0, %c0_i32, %c0_i32_0 : i32, i32, i32
  }
}

</mosaic_0001>

<bundles_post_ra>
// kernel: att_head_forward.1
= control target key start
LH: loop header
LB: loop body
LE: loop exit
PB: predicated region body
PF: predicated region fallthrough
CT: control target
= control target key end

     0   :  { %s4581_s0 = inlined_call_operand.<no memory space> [shape: f32[1], index: 0, kind: input, shape index: {}]   ;;  %s4582_s1 = inlined_call_operand.vmem [shape: f32[2,16,4,32], index: 1, kind: input, shape index: {}]   ;;  %s4583_s2 = inlined_call_operand.vmem [shape: bf16[32,512], index: 2, kind: input, shape index: {}]   ;;  %s4584_s3 = inlined_call_operand.vmem [shape: f32[1,512], index: 3, kind: input, shape index: {}]   ;;  %s4585_s4 = inlined_call_operand.vmem [shape: bf16[512,264], index: 4, kind: input, shape index: {}]   ;;  %s4586_s5 = inlined_call_operand.vmem [shape: f32[1,264], index: 5, kind: input, shape index: {}]   ;;  %s4587_s6 = inlined_call_operand.vmem [shape: bf16[512,264], index: 6, kind: input, shape index: {}]   ;;  %s4588_s7 = inlined_call_operand.vmem [shape: f32[1,264], index: 7, kind: input, shape index: {}]   ;;  %s4589_s8 = inlined_call_operand.vmem [shape: f32[2,1,264], index: 8, kind: output, shape index: {0}]   ;;  %s4590_s9 = inlined_call_operand.vmem [shape: f32[2,1,264], index: 9, kind: output, shape index: {1}]   ;;  %s4591_s10 = inlined_call_operand.hbm [shape: f32[2,4,264], index: 10, kind: output, shape index: {2}]   ;;  %s4592_s11 = inlined_call_operand.hbm [shape: f32[2,4,264], index: 11, kind: output, shape index: {3}]  }
   0x1   :  { %4595 = sst [smem:[#allocation10_spill]] %s4582_s1 }
   0x2   :  { %17 = sst [smem:[#allocation2]] %s4581_s0 }
   0x3   :  { %18 = vsyncpa [#allocation4], 0 }
   0x4   :  { %20 = vsyncpa [#allocation4 + $0x1], 0 }
   0x5   :  { %21 = vsyncpa [#allocation6], 0 }
   0x6   :  { %23 = vsyncpa [#allocation6 + $0x1], 0  ;;  %s3664_s19 = smov 0   ;;  %s3666_s20 = smov 0  }
   0x7   :  { %s3668_s21 = smov 0   ;;  %s3670_s22 = smov 0  }
   0x8 LB: > { %s3685_s0 = sadd.s32 4294967295, %s3595_s22   ;;  %s2765_s23 = sadd.s32 4294967294, %s3595_s22   ;;  %s3595_s22 = sphi %s3670_s22, %s4608_s22   ;;  %s3591_s21 = sphi %s3668_s21, %s4607_s21   ;;  %s3587_s20 = sphi %s3666_s20, %s4606_s20   ;;  %s3583_s19 = sphi %s3664_s19, %s4605_s19  }
   0x9   : > { %s3689_s24 = sadd.s32 1, %s3595_s22   ;;  %s261_s25 = sadd.s32 1, %s3591_s21 }
   0xa   : > { %s258_s26 = ssub.s32 %s3595_s22, %s3689_s24  ;;  %p271_p0 = scmp.ne.s32.totalorder %s3591_s21, %s3587_s20 }
   0xb   : > { %p259_p1 = scmp.eq.s32.totalorder %s258_s26, 0  ;;  %p272_p2 = scmp.eq.s32.totalorder %s3685_s0, 1 }
   0xc   : > { %p277_p3 = scmp.ne.s32.totalorder %s3587_s20, %s3583_s19  ;;  %p278_p4 = scmp.eq.s32.totalorder %s2765_s23, 1 }
   0xd   : > { %s3700_s27 = scalar_select %p259_p1, %s3591_s21, %s261_s25  }
   0xe   : > { %p3702_p5 = por %p272_p2, %p271_p0  ;;  %p3706_p6 = por %p278_p4, %p277_p3 }
   0xf   : > { %4596 = sst [smem:[#allocation9_spill]] %s3700_s27  ;;  %p2768_p7 = scmp.ge.s32.totalorder %s3595_s22, 1 }
  0x10   : > { %p351_p8 = scmp.lt.s32.totalorder %s3595_s22, 3 }
  0x12   : > { %p352_p9 = pnand %p2768_p7, %p351_p8 }
  0x13   : > { %s418_s30 = sld [smem:[#allocation2]] (!%p352_p9)  ;;  %p404_p10 = scmp.lt.s32.totalorder (!%p352_p9), %s3685_s0, 1  ;;  %v3133_v0 = vld [vmem:[%s4583_s2 + $0x4] ss:$16 sps:$4 sm:$0xff] (!%p352_p9)   ;;  %v3135_v1 = vld [vmem:[%s4583_s2 + $0xc] ss:$16 sps:$4 sm:$0xff] (!%p352_p9)  }
  0x14   : > { %355 = sbr.rel (%p352_p9) target bundleno = 777 (0x309), region = 52  ;;  %v3137_v2 = vld [vmem:[%s4583_s2] ss:$16 sps:$4 sm:$0xff] (!%p352_p9)   ;;  %v3597_v3 = vmov (!%p352_p9), 0   ;;  %650 = vmatprep.subr.bf16.mxu0 (!%p352_p9), %v3133_v0  ;;  %v3138_v4 = vld [vmem:[%s4583_s2 + $0x8] ss:$16 sps:$4 sm:$0xff] (!%p352_p9)   ;;  %691 = vmatprep.subr.bf16.mxu1 (!%p352_p9), %v3135_v1 }
  0x15   : > { %682 = vmatprep.mubr.bf16.mxu0 (!%p352_p9), %v3597_v3  ;;  %723 = vmatprep.mubr.bf16.mxu1 (!%p352_p9), %v3597_v3  ;;  %v3139_v5 = vld [vmem:[%s4583_s2 + $0x24] ss:$16 sps:$4 sm:$0xff] (!%p352_p9)   ;;  %v3141_v6 = vld [vmem:[%s4583_s2 + $0x2c] ss:$16 sps:$4 sm:$0xff] (!%p352_p9)   ;;  %s4599_s1 = sld [smem:[#allocation10_spill]] (!%p352_p9)  ;;  %vm535_vm0 = vcmask (!%p352_p9), 257024  }
  0x16   : > { %651 = vmatpush1.bf16.msra.mxu0 (!%p352_p9), %v3137_v2  ;;  %692 = vmatpush1.bf16.msra.mxu1 (!%p352_p9), %v3138_v4  ;;  %v3143_v7 = vld [vmem:[%s4583_s2 + $0x20] ss:$16 sps:$4 sm:$0xff] (!%p352_p9)   ;;  %v3144_v8 = vld [vmem:[%s4583_s2 + $0x28] ss:$16 sps:$4 sm:$0xff] (!%p352_p9)   ;;  %vm646_vm1 = vcmask (!%p352_p9), 261120   ;;  %vm2396_vm2 = vcmask (!%p352_p9), 60416  }
  0x17   : > { %652 = vmatprep.subr.bf16.mxu0 (!%p352_p9), %v3139_v5  ;;  %693 = vmatprep.subr.bf16.mxu1 (!%p352_p9), %v3141_v6  ;;  %v3147_v32 = vld [vmem:[%s4585_s4 + $0x4] ss:$12 sps:$4 sm:$0xff] (!%p352_p9)   ;;  %vm2381_vm3 = vcmask (!%p352_p9), 1043456   ;;  %s4594_s23 = smul.u32 (!%p352_p9), 192, %s3685_s0  ;;  %s3598_s15 = smov (!%p352_p9), [#allocation5]  }
  0x19   : > { %v3746_v9 = vstv (!%p352_p9), %s418_s30  ;;  %s4452_s30 = scalar_lea.hbm (!%p352_p9), %s4592_s11, %s4594_s23 }
  0x1a   : > { %3401 = vrcp.f32 (!%p352_p9), %v3746_v9  ;;  %653 = vmatpush1.bf16.msra.mxu0 (!%p352_p9), %v3143_v7  ;;  %694 = vmatpush1.bf16.msra.mxu1 (!%p352_p9), %v3144_v8  ;;  %v3172_v7 = vld [vmem:[%s4585_s4 + $0xc8] ss:$12 sps:$4 sm:$0xff] (!%p352_p9)  }
  0x1b   : > { %s3717_s14 = scalar_select %p404_p10, %s3685_s0, 1  ;;  %1397 = vmatprep.subr.bf16.mxu0 %v3147_v32  ;;  %2981 = vmatprep.subr.bf16.mxu1 %v3172_v7 }
  0x1d   : > { %s2980_s13 = sshll.u32 %s3717_s14, 6 }
  0x1e   : > { %s3738_s27 = scalar_lea.vmem %s4599_s1, %s2980_s13 }
  0x1f   : > { %v422_v10 = vld [vmem:[%s3738_s27] sm:$0xf]  ;;  %v423_v11 = vld [vmem:[%s3738_s27 + $0x4] sm:$0xf]  ;;  %v424_v12 = vld [vmem:[%s3738_s27 + $0x8] sm:$0xf] }
  0x20   : > { %v425_v13 = vld [vmem:[%s3738_s27 + $0xc] sm:$0xf]  ;;  %v426_v14 = vld [vmem:[%s3738_s27 + $0x10] sm:$0xf]  ;;  %v427_v15 = vld [vmem:[%s3738_s27 + $0x14] sm:$0xf] }
  0x21   : > { %v438_v16 = vmax.f32 %v422_v10, 1e-06  ;;  %v439_v17 = vmax.f32 %v423_v11, 1e-06  ;;  %v428_v18 = vld [vmem:[%s3738_s27 + $0x18] sm:$0xf] }
  0x22   : > { %v440_v19 = vmax.f32 %v424_v12, 1e-06  ;;  %v441_v20 = vmax.f32 %v425_v13, 1e-06  ;;  %v429_v21 = vld [vmem:[%s3738_s27 + $0x1c] sm:$0xf] }
  0x23   : > { %v442_v22 = vmax.f32 %v426_v14, 1e-06  ;;  %3403 = vlog2.f32 %v438_v16  ;;  %v430_v23 = vld [vmem:[%s3738_s27 + $0x20] sm:$0xf]  ;;  %v443_v24 = vmax.f32 %v427_v15, 1e-06 }
  0x24   : > { %3405 = vlog2.f32 %v439_v17  ;;  %v431_v25 = vld [vmem:[%s3738_s27 + $0x24] sm:$0xf]  ;;  %v432_v26 = vld [vmem:[%s3738_s27 + $0x28] sm:$0xf]  ;;  %v444_v27 = vmax.f32 %v428_v18, 1e-06  ;;  %v3402_v30 = vpop.eup %3401 }
  0x25   : > { %3407 = vlog2.f32 %v440_v19  ;;  %v433_v28 = vld [vmem:[%s3738_s27 + $0x2c] sm:$0xf]  ;;  %v445_v29 = vmax.f32 %v429_v21, 1e-06  ;;  %v446_v31 = vmax.f32 %v430_v23, 1e-06  ;;  %3083 = vpush %v3402_v30 }
  0x26   : > { %3409 = vlog2.f32 %v441_v20  ;;  %v434_v33 = vld [vmem:[%s3738_s27 + $0x30] sm:$0xf]  ;;  %v447_v34 = vmax.f32 %v431_v25, 1e-06  ;;  %v435_v35 = vld [vmem:[%s3738_s27 + $0x34] sm:$0xf] }
  0x27   : > { %3411 = vlog2.f32 %v442_v22  ;;  %v448_v36 = vmax.f32 %v432_v26, 1e-06  ;;  %v436_v37 = vld [vmem:[%s3738_s27 + $0x38] sm:$0xf]  ;;  %v449_v38 = vmax.f32 %v433_v28, 1e-06 }
  0x28   : > { %3413 = vlog2.f32 %v443_v24  ;;  %v437_v39 = vld [vmem:[%s3738_s27 + $0x3c] sm:$0xf]  ;;  %v450_v40 = vmax.f32 %v434_v33, 1e-06  ;;  %v451_v41 = vmax.f32 %v435_v35, 1e-06 }
  0x29   : > { %3415 = vlog2.f32 %v444_v27  ;;  %v452_v43 = vmax.f32 %v436_v37, 1e-06  ;;  %v453_v45 = vmax.f32 %v437_v39, 1e-06 }
  0x2a   : > { %3417 = vlog2.f32 %v445_v29 }
  0x2b   : > { %3419 = vlog2.f32 %v446_v31 }
  0x2c   : > { %3421 = vlog2.f32 %v447_v34 }
  0x2d   : > { %v3404_v42 = vpop.eup %3403  ;;  %3423 = vlog2.f32 %v448_v36 }
  0x2e   : > { %v3406_v44 = vpop.eup %3405  ;;  %v455_v46 = vmul.f32 0.6931472, %v3404_v42  ;;  %3425 = vlog2.f32 %v449_v38 }
  0x2f   : > { %v3408_v47 = vpop.eup %3407  ;;  %v457_v48 = vmul.f32 0.6931472, %v3406_v44  ;;  %3427 = vlog2.f32 %v450_v40 }
  0x30   : > { %v3410_v49 = vpop.eup %3409  ;;  %v459_v50 = vmul.f32 0.6931472, %v3408_v47  ;;  %3429 = vlog2.f32 %v451_v41  ;;  %v487_v51 = vmul.f32 %v455_v46, %v3746_v9 }
  0x31   : > { %v3412_v52 = vpop.eup %3411  ;;  %v461_v53 = vmul.f32 0.6931472, %v3410_v49  ;;  %3431 = vlog2.f32 %v452_v43  ;;  %v488_v54 = vmul.f32 %v457_v48, %v3746_v9 }
  0x32   : > { %v3414_v55 = vpop.eup %3413  ;;  %v463_v56 = vmul.f32 0.6931472, %v3412_v52  ;;  %3433 = vlog2.f32 %v453_v45  ;;  %v489_v57 = vmul.f32 %v459_v50, %v3746_v9  ;;  %v503_v58 = vmul.f32 1.442695, %v487_v51 }
  0x33   : > { %v3416_v59 = vpop.eup %3415  ;;  %v465_v60 = vmul.f32 0.6931472, %v3414_v55  ;;  %v490_v61 = vmul.f32 %v461_v53, %v3746_v9  ;;  %v505_v62 = vmul.f32 1.442695, %v488_v54 }
  0x34   : > { %v3418_v63 = vpop.eup %3417  ;;  %v467_v0 = vmul.f32 0.6931472, %v3416_v59  ;;  %v491_v1 = vmul.f32 %v463_v56, %v3746_v9  ;;  %3435 = vpow2.f32 %v503_v58  ;;  %v507_v2 = vmul.f32 1.442695, %v489_v57 }
  0x35   : > { %v3420_v3 = vpop.eup %3419  ;;  %v469_v4 = vmul.f32 0.6931472, %v3418_v63  ;;  %v492_v5 = vmul.f32 %v465_v60, %v3746_v9  ;;  %3437 = vpow2.f32 %v505_v62  ;;  %v509_v6 = vmul.f32 1.442695, %v490_v61 }
  0x36   : > { %v3422_v8 = vpop.eup %3421  ;;  %v471_v10 = vmul.f32 0.6931472, %v3420_v3  ;;  %v493_v11 = vmul.f32 %v467_v0, %v3746_v9  ;;  %3439 = vpow2.f32 %v507_v2  ;;  %v511_v12 = vmul.f32 1.442695, %v491_v1 }
  0x37   : > { %v3424_v13 = vpop.eup %3423  ;;  %v473_v14 = vmul.f32 0.6931472, %v3422_v8  ;;  %v494_v15 = vmul.f32 %v469_v4, %v3746_v9  ;;  %3441 = vpow2.f32 %v509_v6  ;;  %v513_v16 = vmul.f32 1.442695, %v492_v5 }
  0x38   : > { %v3426_v17 = vpop.eup %3425  ;;  %v475_v18 = vmul.f32 0.6931472, %v3424_v13  ;;  %v495_v19 = vmul.f32 %v471_v10, %v3746_v9  ;;  %3443 = vpow2.f32 %v511_v12  ;;  %v515_v20 = vmul.f32 1.442695, %v493_v11 }
  0x39   : > { %v3428_v21 = vpop.eup %3427  ;;  %v477_v22 = vmul.f32 0.6931472, %v3426_v17  ;;  %v496_v23 = vmul.f32 %v473_v14, %v3746_v9  ;;  %3445 = vpow2.f32 %v513_v16  ;;  %v517_v24 = vmul.f32 1.442695, %v494_v15 }
  0x3a   : > { %v3430_v25 = vpop.eup %3429  ;;  %v479_v26 = vmul.f32 0.6931472, %v3428_v21  ;;  %v497_v27 = vmul.f32 %v475_v18, %v3746_v9  ;;  %3447 = vpow2.f32 %v515_v20  ;;  %v519_v31 = vmul.f32 1.442695, %v495_v19 }
  0x3b   : > { %v3432_v28 = vpop.eup %3431  ;;  %v481_v29 = vmul.f32 0.6931472, %v3430_v25  ;;  %v498_v30 = vmul.f32 %v477_v22, %v3746_v9  ;;  %v521_v34 = vmul.f32 1.442695, %v496_v23  ;;  %3449 = vpow2.f32 %v517_v24 }
  0x3c   : > { %v3434_v32 = vpop.eup %3433  ;;  %v499_v33 = vmul.f32 %v479_v26, %v3746_v9  ;;  %v483_v35 = vmul.f32 0.6931472, %v3432_v28  ;;  %v523_v36 = vmul.f32 1.442695, %v497_v27  ;;  %3451 = vpow2.f32 %v519_v31 }
  0x3d   : > { %v485_v38 = vmul.f32 0.6931472, %v3434_v32  ;;  %v525_v39 = vmul.f32 1.442695, %v498_v30  ;;  %v500_v41 = vmul.f32 %v481_v29, %v3746_v9  ;;  %3453 = vpow2.f32 %v521_v34 }
  0x3e   : > { %v3436_v37 = vpop.eup %3435  ;;  %v527_v42 = vmul.f32 1.442695, %v499_v33  ;;  %3455 = vpow2.f32 %v523_v36  ;;  %v501_v50 = vmul.f32 %v483_v35, %v3746_v9  ;;  %v3145_v35 = vld [vmem:[%s4585_s4] ss:$12 sps:$4 sm:$0xff]   ;;  %v3173_v36 = vld [vmem:[%s4585_s4 + $0x8] ss:$12 sps:$4 sm:$0xff]  }
  0x3f   : > { %v3438_v40 = vpop.eup %3437  ;;  %v536_v43 = vsel %vm535_vm0, %v3436_v37, 0.0  ;;  %3457 = vpow2.f32 %v525_v39  ;;  %v502_v53 = vmul.f32 %v485_v38, %v3746_v9  ;;  %v529_v54 = vmul.f32 1.442695, %v500_v41  ;;  %v3150_v37 = vld [vmem:[%s4585_s4 + $0x1c] ss:$12 sps:$4 sm:$0xff]  }
  0x40   : > { %v3440_v44 = vpop.eup %3439  ;;  %v537_v45 = vsel %vm535_vm0, %v3438_v40, 0.0  ;;  %3459 = vpow2.f32 %v527_v42  ;;  %v531_v59 = vmul.f32 1.442695, %v501_v50  ;;  %v3177_v38 = vld [vmem:[%s4585_s4 + $0xe0] ss:$12 sps:$4 sm:$0xff]  }
  0x41   : > { %v3442_v46 = vpop.eup %3441  ;;  %v538_v47 = vadd.f32 %v537_v45, %v536_v43  ;;  %v539_v48 = vsel %vm535_vm0, %v3440_v44, 0.0  ;;  %v533_v62 = vmul.f32 1.442695, %v502_v53  ;;  %3461 = vpow2.f32 %v529_v54  ;;  %v3148_v41 = vld [vmem:[%s4585_s4 + $0x18] ss:$12 sps:$4 sm:$0xff]  }
  0x42   : > { %v3444_v49 = vpop.eup %3443  ;;  %v541_v51 = vsel %vm535_vm0, %v3442_v46, 0.0  ;;  %3463 = vpow2.f32 %v531_v59  ;;  %v3178_v42 = vld [vmem:[%s4585_s4 + $0x20] ss:$12 sps:$4 sm:$0xff]   ;;  %v3182_v44 = vld [vmem:[%s4585_s4 + $0xf8] ss:$12 sps:$4 sm:$0xff]  }
  0x43   : > { %v3446_v52 = vpop.eup %3445  ;;  %v540_v55 = vadd.f32 %v539_v48, %v538_v47  ;;  %v543_v56 = vsel %vm535_vm0, %v3444_v49, 0.0  ;;  %3465 = vpow2.f32 %v533_v62  ;;  %v3153_v43 = vld [vmem:[%s4585_s4 + $0x34] ss:$12 sps:$4 sm:$0xff]   ;;  %v3151_v45 = vld [vmem:[%s4585_s4 + $0x30] ss:$12 sps:$4 sm:$0xff]  }
  0x44   : > { %v3448_v57 = vpop.eup %3447  ;;  %v545_v60 = vsel %vm535_vm0, %v3446_v52, 0.0  ;;  %v3183_v46 = vld [vmem:[%s4585_s4 + $0x38] ss:$12 sps:$4 sm:$0xff]   ;;  %v3187_v48 = vld [vmem:[%s4585_s4 + $0x110] ss:$12 sps:$4 sm:$0xff]  }
  0x45   : > { %v542_v58 = vadd.f32 %v541_v51, %v540_v55  ;;  %v3450_v61 = vpop.eup %3449  ;;  %v547_v0 = vsel %vm535_vm0, %v3448_v57, 0.0  ;;  %v3156_v47 = vld [vmem:[%s4585_s4 + $0x4c] ss:$12 sps:$4 sm:$0xff]   ;;  %v3154_v49 = vld [vmem:[%s4585_s4 + $0x48] ss:$12 sps:$4 sm:$0xff]  }
  0x46   : > { %v3452_v1 = vpop.eup %3451  ;;  %v549_v9 = vsel %vm535_vm0, %v3450_v61, 0.0  ;;  %v3188_v50 = vld [vmem:[%s4585_s4 + $0x50] ss:$12 sps:$4 sm:$0xff]   ;;  %v3192_v52 = vld [vmem:[%s4585_s4 + $0x128] ss:$12 sps:$4 sm:$0xff]  }
  0x47   : > { %v544_v63 = vadd.f32 %v543_v56, %v542_v58  ;;  %v3454_v3 = vpop.eup %3453  ;;  %v551_v7 = vsel %vm535_vm0, %v3452_v1, 0.0  ;;  %v3159_v51 = vld [vmem:[%s4585_s4 + $0x64] ss:$12 sps:$4 sm:$0xff]   ;;  %v3157_v53 = vld [vmem:[%s4585_s4 + $0x60] ss:$12 sps:$4 sm:$0xff]  }
  0x48   : > { %v3456_v4 = vpop.eup %3455  ;;  %v553_v11 = vsel %vm535_vm0, %v3454_v3, 0.0  ;;  %v3193_v54 = vld [vmem:[%s4585_s4 + $0x68] ss:$12 sps:$4 sm:$0xff]   ;;  %v3197_v56 = vld [vmem:[%s4585_s4 + $0x140] ss:$12 sps:$4 sm:$0xff]  }
  0x49   : > { %v546_v2 = vadd.f32 %v545_v60, %v544_v63  ;;  %v3458_v6 = vpop.eup %3457  ;;  %v555_v13 = vsel %vm535_vm0, %v3456_v4, 0.0  ;;  %v3162_v55 = vld [vmem:[%s4585_s4 + $0x7c] ss:$12 sps:$4 sm:$0xff]   ;;  %v3160_v57 = vld [vmem:[%s4585_s4 + $0x78] ss:$12 sps:$4 sm:$0xff]  }
  0x4a   : > { %v3460_v8 = vpop.eup %3459  ;;  %v557_v14 = vsel %vm535_vm0, %v3458_v6, 0.0  ;;  %v3198_v58 = vld [vmem:[%s4585_s4 + $0x80] ss:$12 sps:$4 sm:$0xff]   ;;  %v3163_v60 = vld [vmem:[%s4585_s4 + $0x90] ss:$12 sps:$4 sm:$0xff]  }
  0x4b   : > { %v548_v5 = vadd.f32 %v547_v0, %v546_v2  ;;  %v559_v15 = vsel %vm535_vm0, %v3460_v8, 0.0  ;;  %v3462_v17 = vpop.eup %3461  ;;  %v3165_v59 = vld [vmem:[%s4585_s4 + $0x94] ss:$12 sps:$4 sm:$0xff]   ;;  %v3168_v61 = vld [vmem:[%s4585_s4 + $0xac] ss:$12 sps:$4 sm:$0xff]  }
  0x4c   : > { %v3464_v19 = vpop.eup %3463  ;;  %v561_v21 = vsel %vm535_vm0, %v3462_v17, 0.0  ;;  %v3166_v62 = vld [vmem:[%s4585_s4 + $0xa8] ss:$12 sps:$4 sm:$0xff]   ;;  %v3171_v63 = vld [vmem:[%s4585_s4 + $0xc4] ss:$12 sps:$4 sm:$0xff]  }
  0x4d   : > { %v550_v10 = vadd.f32 %v549_v9, %v548_v5  ;;  %v3466_v22 = vpop.eup %3465  ;;  %v563_v24 = vsel %vm535_vm0, %v3464_v19, 0.0  ;;  %v3169_v0 = vld [vmem:[%s4585_s4 + $0xc0] ss:$12 sps:$4 sm:$0xff]   ;;  %v3176_v1 = vld [vmem:[%s4585_s4 + $0xdc] ss:$12 sps:$4 sm:$0xff]  }
  0x4e   : > { %v565_v26 = vsel %vm535_vm0, %v3466_v22, 0.0  ;;  %v3174_v2 = vld [vmem:[%s4585_s4 + $0xd8] ss:$12 sps:$4 sm:$0xff]   ;;  %v3181_v3 = vld [vmem:[%s4585_s4 + $0xf4] ss:$12 sps:$4 sm:$0xff]  }
  0x4f   : > { %v552_v12 = vadd.f32 %v551_v7, %v550_v10  ;;  %v3179_v9 = vld [vmem:[%s4585_s4 + $0xf0] ss:$12 sps:$4 sm:$0xff]   ;;  %v3186_v4 = vld [vmem:[%s4585_s4 + $0x10c] ss:$12 sps:$4 sm:$0xff]   ;;  %v3184_v5 = vld [vmem:[%s4585_s4 + $0x108] ss:$12 sps:$4 sm:$0xff]  }
  0x50   : > { %v3191_v6 = vld [vmem:[%s4585_s4 + $0x124] ss:$12 sps:$4 sm:$0xff]   ;;  %v3189_v7 = vld [vmem:[%s4585_s4 + $0x120] ss:$12 sps:$4 sm:$0xff]   ;;  %v3196_v8 = vld [vmem:[%s4585_s4 + $0x13c] ss:$12 sps:$4 sm:$0xff]  }
  0x51   : > { %v554_v16 = vadd.f32 %v553_v11, %v552_v12  ;;  %v3194_v10 = vld [vmem:[%s4585_s4 + $0x138] ss:$12 sps:$4 sm:$0xff]   ;;  %v3201_v11 = vld [vmem:[%s4585_s4 + $0x154] ss:$12 sps:$4 sm:$0xff]  }
  0x52   : > { %v3202_v12 = vld [vmem:[%s4585_s4 + $0x158] ss:$12 sps:$4 sm:$0xff]   ;;  %v3204_v17 = vld [vmem:[%s4585_s4 + $0x168] ss:$12 sps:$4 sm:$0xff]  }
  0x53   : > { %v556_v18 = vadd.f32 %v555_v13, %v554_v16  ;;  %v3199_v13 = vld [vmem:[%s4585_s4 + $0x150] ss:$12 sps:$4 sm:$0xff]  }
  0x54   : > { %v3207_v16 = vld [vmem:[%s4585_s4 + $0x170] ss:$12 sps:$4 sm:$0xff]  }
  0x55   : > { %v558_v20 = vadd.f32 %v557_v14, %v556_v18  ;;  %v3203_v14 = vld [vmem:[%s4585_s4 + $0x98] ss:$12 sps:$4 sm:$0xff]   ;;  %v3208_v18 = vld [vmem:[%s4585_s4 + $0xb0] ss:$12 sps:$4 sm:$0xff]  }
  0x56   : > { %s3084_s16 = spop %3083  ;;  %v3211_v19 = vld [vmem:[%s4585_s4 + $0x184] ss:$12 sps:$4 sm:$0xff]  }
  0x57   : > { %v560_v23 = vadd.f32 %v559_v15, %v558_v20  ;;  %v571_v31 = vstv %s3084_s16  ;;  %v3206_v15 = vld [vmem:[%s4585_s4 + $0x16c] ss:$12 sps:$4 sm:$0xff]   ;;  %v3212_v20 = vld [vmem:[%s4585_s4 + $0x248] ss:$12 sps:$4 sm:$0xff]   ;;  %s4430_s16 = sand.u32 1, %s3587_s20  }
  0x58   : > { %s4593_s17 = smul.u32 12, %s4430_s16  ;;  %s2592_s13 = scalar_lea.sflag [#allocation6], %s4430_s16 }
  0x59   : > { %v562_v25 = vadd.f32 %v561_v21, %v560_v23  ;;  %v586_v21 = vlaneseq }
  0x5a   : > { %s4436_s18 = scalar_lea.vmem [#allocation5], %s4593_s17 }
  0x5b   : > { %v564_v27 = vadd.f32 %v563_v24, %v562_v25  ;;  %v3948_v22 = vshrl.u32 %v586_v21, 7  ;;  %v3956_v24 = vld [vmem:[%s4584_s3] sm:$0xf]  ;;  %s2626_s25 = sshll.u32 %s4436_s18, 4  ;;  %s4454_s25 = int_to_ptr.vmem [resolvable:$true] %s2626_s25 }
  0x5c   : > { %s3501_s27 = scalar_lea.vmem %s4454_s25, 192 }
  0x5d   : > { %v566_v28 = vadd.f32 %v565_v26, %v564_v27  ;;  %v3951_v23 = vsub.s32 0, %v3948_v22  ;;  %v3959_v25 = vsub.s32 1, %v3948_v22  ;;  %v600_v26 = vsub.s32 3, %v3948_v22  ;;  %p3502_p11 = scmp.ne.s32.totalorder %s4454_s25, %s3501_s27 }
  0x5f   : > { %v568_v29 = vmul.f32 0.0625, %v566_v28  ;;  %v589_v27 = vrot.slane %v3956_v24, %v3951_v23  ;;  %v593_v28 = vrot.slane %v3956_v24, %v3959_v25  ;;  %p3503_p12 = pnand %p3502_p11, %p3702_p5 }
  0x61   : > { %3467 = vlog2.f32 %v568_v29  ;;  %v601_v29 = vrot.slane %v3956_v24, %v600_v26  ;;  %v3257_v26 = vld [vmem:[%s4585_s4 + $0x25c] ss:$12 sps:$4 sm:$0xff]   ;;  %p3504_p13 = pneg %p3503_p12 }
  0x6b   : > { %v3468_v30 = vpop.eup %3467 }
  0x6c   : > { %v570_v32 = vmul.f32 0.6931472, %v3468_v30 }
  0x6e   : > { %v572_v33 = vmul.f32 %v571_v31, %v570_v32 }
  0x70   : > { %v573_v34 = vmul.f32 1.442695, %v572_v33 }
  0x72   : > { %3469 = vpow2.f32 %v573_v34 }
  0x7c   : > { %v3470_v39 = vpop.eup %3469 }
  0x7d   : > { %v575_v40 = vpack.c.bf16 %v3470_v39, %v3470_v39 }
  0x7f   : > { %2779 = vmatmul.mubr.msk.bf16.vlgmr.msra.gmra.mrb[0].mxu0 %vm646_vm1, %v575_v40  ;;  %2780 = vmatmul.mubr.msk.bf16.vlgmr.msra.gmra.mrb[0].mxu1 %vm646_vm1, %v575_v40 }
  0x80   : > { %1398 = vmatpush1.bf16.msra.mxu0 %v3145_v35  ;;  %2982 = vmatpush3.bf16.msra.mxu1 %v3173_v36 }
  0x81   : > { %1399 = vmatprep.subr.bf16.mxu0 %v3150_v37  ;;  %2983 = vmatprep.subr.bf16.mxu1 %v3177_v38 }
  0x84   : > { %1400 = vmatpush1.bf16.msra.mxu0 %v3148_v41  ;;  %2984 = vmatpush3.bf16.msra.mxu1 %v3178_v42 }
  0x85   : > { %1401 = vmatprep.subr.bf16.mxu0 %v3153_v43  ;;  %2985 = vmatprep.subr.bf16.mxu1 %v3182_v44 }
  0x88   : > { %1402 = vmatpush1.bf16.msra.mxu0 %v3151_v45  ;;  %2986 = vmatpush3.bf16.msra.mxu1 %v3183_v46  ;;  %v3209_v45 = vld [vmem:[%s4585_s4 + $0x180] ss:$12 sps:$4 sm:$0xff]   ;;  %v3213_v46 = vld [vmem:[%s4585_s4 + $0x188] ss:$12 sps:$4 sm:$0xff]  }
  0x89   : > { %1403 = vmatprep.subr.bf16.mxu0 %v3156_v47  ;;  %2987 = vmatprep.subr.bf16.mxu1 %v3187_v48  ;;  %v3216_v48 = vld [vmem:[%s4585_s4 + $0x19c] ss:$12 sps:$4 sm:$0xff]  }
  0x8c   : > { %1404 = vmatpush1.bf16.msra.mxu0 %v3154_v49  ;;  %2988 = vmatpush3.bf16.msra.mxu1 %v3188_v50  ;;  %v3217_v49 = vld [vmem:[%s4585_s4 + $0x260] ss:$12 sps:$4 sm:$0xff]  }
  0x8d   : > { %1405 = vmatprep.subr.bf16.mxu0 %v3159_v51  ;;  %2989 = vmatprep.subr.bf16.mxu1 %v3192_v52  ;;  %v3214_v51 = vld [vmem:[%s4585_s4 + $0x198] ss:$12 sps:$4 sm:$0xff]   ;;  %v3218_v52 = vld [vmem:[%s4585_s4 + $0x1a0] ss:$12 sps:$4 sm:$0xff]  }
  0x90   : > { %1406 = vmatpush1.bf16.msra.mxu0 %v3157_v53  ;;  %2990 = vmatpush3.bf16.msra.mxu1 %v3193_v54  ;;  %v3221_v53 = vld [vmem:[%s4585_s4 + $0x1b4] ss:$12 sps:$4 sm:$0xff]   ;;  %v3222_v54 = vld [vmem:[%s4585_s4 + $0x278] ss:$12 sps:$4 sm:$0xff]  }
  0x91   : > { %1407 = vmatprep.subr.bf16.mxu0 %v3162_v55  ;;  %2991 = vmatprep.subr.bf16.mxu1 %v3197_v56  ;;  %v3219_v55 = vld [vmem:[%s4585_s4 + $0x1b0] ss:$12 sps:$4 sm:$0xff]   ;;  %v3223_v56 = vld [vmem:[%s4585_s4 + $0x1b8] ss:$12 sps:$4 sm:$0xff]  }
  0x94   : > { %1408 = vmatpush1.bf16.msra.mxu0 %v3160_v57  ;;  %2992 = vmatpush3.bf16.msra.mxu1 %v3198_v58  ;;  %v3226_v57 = vld [vmem:[%s4585_s4 + $0x1cc] ss:$12 sps:$4 sm:$0xff]   ;;  %v3227_v58 = vld [vmem:[%s4585_s4 + $0x290] ss:$12 sps:$4 sm:$0xff]  }
  0x95   : > { %1409 = vmatprep.subr.bf16.mxu0 %v3165_v59  ;;  %2993 = vmatprep.subr.bf16.mxu1 %v3202_v12  ;;  %v3224_v59 = vld [vmem:[%s4585_s4 + $0x1c8] ss:$12 sps:$4 sm:$0xff]   ;;  %v3246_v12 = vld [vmem:[%s4585_s4 + $0x22c] ss:$12 sps:$4 sm:$0xff]  }
  0x98   : > { %1410 = vmatpush1.bf16.msra.mxu0 %v3163_v60  ;;  %2994 = vmatpush3.bf16.msra.mxu1 %v3203_v14  ;;  %v3228_v60 = vld [vmem:[%s4585_s4 + $0x1d0] ss:$12 sps:$4 sm:$0xff]   ;;  %v3244_v14 = vld [vmem:[%s4585_s4 + $0x228] ss:$12 sps:$4 sm:$0xff]  }
  0x99   : > { %1411 = vmatprep.subr.bf16.mxu0 %v3168_v61  ;;  %2995 = vmatprep.subr.bf16.mxu1 %v3207_v16  ;;  %v3231_v61 = vld [vmem:[%s4585_s4 + $0x1e4] ss:$12 sps:$4 sm:$0xff]  }
  0x9c   : > { %1412 = vmatpush1.bf16.msra.mxu0 %v3166_v62  ;;  %2996 = vmatpush3.bf16.msra.mxu1 %v3208_v18  ;;  %v3232_v62 = vld [vmem:[%s4585_s4 + $0x2a8] ss:$12 sps:$4 sm:$0xff]   ;;  %v3254_v18 = vld [vmem:[%s4587_s6 + $0x4] ss:$12 sps:$4 sm:$0xff]  }
  0x9d   : > { %1413 = vmatprep.subr.bf16.mxu0 %v3171_v63  ;;  %3003 = vmatprep.subr.bf16.mxu1 %v3212_v20  ;;  %v3229_v63 = vld [vmem:[%s4585_s4 + $0x1e0] ss:$12 sps:$4 sm:$0xff]  }
  0x9e   : > { %v3252_v20 = vld [vmem:[%s4587_s6] ss:$12 sps:$4 sm:$0xff]  }
  0xa0   : > { %1414 = vmatpush1.bf16.msra.mxu0 %v3169_v0  ;;  %v3233_v0 = vld [vmem:[%s4585_s4 + $0x1e8] ss:$12 sps:$4 sm:$0xff]  }
  0xa1   : > { %1415 = vmatprep.subr.bf16.mxu0 %v3176_v1  ;;  %v4036_v1 = vsub.s32 2, %v3948_v22 }
  0xa4   : > { %1416 = vmatpush1.bf16.msra.mxu0 %v3174_v2  ;;  %v3236_v2 = vld [vmem:[%s4585_s4 + $0x1fc] ss:$12 sps:$4 sm:$0xff]  }
  0xa5   : > { %1417 = vmatprep.subr.bf16.mxu0 %v3181_v3  ;;  %v3237_v3 = vld [vmem:[%s4585_s4 + $0x2c0] ss:$12 sps:$4 sm:$0xff]  }
  0xa8   : > { %1418 = vmatpush1.bf16.msra.mxu0 %v3179_v9  ;;  %v3234_v9 = vld [vmem:[%s4585_s4 + $0x1f8] ss:$12 sps:$4 sm:$0xff]  }
  0xa9   : > { %1419 = vmatprep.subr.bf16.mxu0 %v3186_v4  ;;  %v3238_v4 = vld [vmem:[%s4585_s4 + $0x200] ss:$12 sps:$4 sm:$0xff]  }
  0xac   : > { %1420 = vmatpush1.bf16.msra.mxu0 %v3184_v5  ;;  %v597_v5 = vrot.slane %v3956_v24, %v4036_v1 }
  0xad   : > { %1421 = vmatprep.subr.bf16.mxu0 %v3191_v6  ;;  %v3241_v6 = vld [vmem:[%s4585_s4 + $0x214] ss:$12 sps:$4 sm:$0xff]  }
  0xb0   : > { %1422 = vmatpush1.bf16.msra.mxu0 %v3189_v7  ;;  %v3242_v7 = vld [vmem:[%s4585_s4 + $0x2d8] ss:$12 sps:$4 sm:$0xff]  }
  0xb1   : > { %1423 = vmatprep.subr.bf16.mxu0 %v3196_v8  ;;  %v3239_v8 = vld [vmem:[%s4585_s4 + $0x210] ss:$12 sps:$4 sm:$0xff]  }
  0xb4   : > { %1424 = vmatpush1.bf16.msra.mxu0 %v3194_v10  ;;  %v3243_v10 = vld [vmem:[%s4585_s4 + $0x218] ss:$12 sps:$4 sm:$0xff]  }
  0xb5   : > { %1425 = vmatprep.subr.bf16.mxu0 %v3201_v11 }
  0xb8   : > { %1426 = vmatpush1.bf16.msra.mxu0 %v3199_v13  ;;  %v3247_v13 = vld [vmem:[%s4585_s4 + $0x2f0] ss:$12 sps:$4 sm:$0xff]  }
  0xb9   : > { %1427 = vmatprep.subr.bf16.mxu0 %v3206_v15  ;;  %v3248_v15 = vld [vmem:[%s4585_s4 + $0x230] ss:$12 sps:$4 sm:$0xff]  }
  0xbc   : > { %1428 = vmatpush1.bf16.msra.mxu0 %v3204_v17  ;;  %v3251_v17 = vld [vmem:[%s4585_s4 + $0x244] ss:$12 sps:$4 sm:$0xff]  }
  0xbd   : > { %1438 = vmatprep.subr.bf16.mxu0 %v3211_v19  ;;  %v3249_v19 = vld [vmem:[%s4585_s4 + $0x240] ss:$12 sps:$4 sm:$0xff]  }
 0x152   : > { %v684_v30 = vpop.f32.mrb[0].mxu0  ;;  %v3967_v31 = vpop.f32.mrb[0].mxu1 }
 0x153   : > { %v685_v32 = vadd.f32 %v684_v30, %v589_v27  ;;  %v686_v33 = vpop.f32.mrb[1].mxu0  ;;  %v727_v34 = vpop.f32.mrb[1].mxu1  ;;  %v726_v11 = vadd.f32 %v3967_v31, %v597_v5  ;;  %v3260_v27 = vld [vmem:[%s4587_s6 + $0x1c] ss:$12 sps:$4 sm:$0xff]   ;;  %v3263_v30 = vld [vmem:[%s4585_s4 + $0x274] ss:$12 sps:$4 sm:$0xff]  }
 0x154   : > { %v687_v35 = vadd.f32 %v686_v33, %v593_v28  ;;  %v728_v36 = vadd.f32 %v727_v34, %v601_v29  ;;  %v688_v37 = vpop.f32.mrb[2].mxu0  ;;  %v729_v38 = vpop.f32.mrb[2].mxu1  ;;  %v3255_v28 = vld [vmem:[%s4585_s4 + $0x258] ss:$12 sps:$4 sm:$0xff]   ;;  %v3266_v31 = vld [vmem:[%s4587_s6 + $0x34] ss:$12 sps:$4 sm:$0xff]  }
 0x155   : > { %v732_v39 = vmax.f32 %v685_v32, 0.0  ;;  %v689_v40 = vpop.f32.mrb[3].mxu0  ;;  %v730_v41 = vpop.f32.mrb[3].mxu1  ;;  %v734_v16 = vmax.f32 %v726_v11, 0.0  ;;  %v3258_v29 = vld [vmem:[%s4587_s6 + $0x18] ss:$12 sps:$4 sm:$0xff]  }
 0x156   : > { %v733_v42 = vmax.f32 %v687_v35, 0.0  ;;  %v735_v43 = vmax.f32 %v728_v36, 0.0  ;;  %v3261_v32 = vld [vmem:[%s4585_s4 + $0x270] ss:$12 sps:$4 sm:$0xff]   ;;  %v3269_v34 = vld [vmem:[%s4585_s4 + $0x28c] ss:$12 sps:$4 sm:$0xff]  }
 0x157   : > { %v3977_v47 = vpack.c.bf16 %v732_v39, %v732_v39  ;;  %v4089_v24 = vpack.c.bf16 %v734_v16, %v734_v16  ;;  %v3264_v33 = vld [vmem:[%s4587_s6 + $0x30] ss:$12 sps:$4 sm:$0xff]   ;;  %v3272_v35 = vld [vmem:[%s4587_s6 + $0x4c] ss:$12 sps:$4 sm:$0xff]   ;;  %v3267_v36 = vld [vmem:[%s4585_s4 + $0x288] ss:$12 sps:$4 sm:$0xff]  }
 0x158   : > { %v3969_v44 = vpack.c.bf16 %v733_v42, %v733_v42  ;;  %v3987_v50 = vpack.c.bf16 %v735_v43, %v735_v43  ;;  %v3270_v37 = vld [vmem:[%s4587_s6 + $0x48] ss:$12 sps:$4 sm:$0xff]   ;;  %v3275_v38 = vld [vmem:[%s4585_s4 + $0x2a4] ss:$12 sps:$4 sm:$0xff]   ;;  %v3273_v40 = vld [vmem:[%s4585_s4 + $0x2a0] ss:$12 sps:$4 sm:$0xff]  }
 0x159   : > { %v3278_v39 = vld [vmem:[%s4587_s6 + $0x64] ss:$12 sps:$4 sm:$0xff]   ;;  %v3276_v41 = vld [vmem:[%s4587_s6 + $0x60] ss:$12 sps:$4 sm:$0xff]   ;;  %v3281_v42 = vld [vmem:[%s4585_s4 + $0x2bc] ss:$12 sps:$4 sm:$0xff]  }
 0x15a   : > { %1429 = vmatprep.mubr.bf16.mxu0 %v3969_v44  ;;  %1511 = vmatprep.mubr.bf16.mxu1 %v3969_v44  ;;  %v3284_v43 = vld [vmem:[%s4587_s6 + $0x7c] ss:$12 sps:$4 sm:$0xff]   ;;  %v3317_v11 = vld [vmem:[%s4587_s6 + $0x120] ss:$12 sps:$4 sm:$0xff]  }
 0x15b   : > { %1430 = vmatmul.mubr.bf16.vlgmr.msra.gmra.mrb[4].mxu0 %v3977_v47  ;;  %1512 = vmatmul.mubr.bf16.vlgmr.msra.gmra.mrb[4].mxu1 %v3977_v47  ;;  %v3315_v5 = vld [vmem:[%s4587_s6 + $0x110] ss:$12 sps:$4 sm:$0xff]   ;;  %v3326_v16 = vld [vmem:[%s4587_s6 + $0x80] ss:$12 sps:$4 sm:$0xff]  }
 0x15c   : > { %1439 = vmatpush1.bf16.msra.mxu0 %v3209_v45  ;;  %3004 = vmatpush3.bf16.msra.mxu1 %v3213_v46  ;;  %v3279_v45 = vld [vmem:[%s4585_s4 + $0x2b8] ss:$12 sps:$4 sm:$0xff]  }
 0x15d   : > { %1470 = vmatprep.mubr.bf16.mxu0 %v3987_v50  ;;  %1551 = vmatprep.mubr.bf16.mxu1 %v3987_v50  ;;  %v3282_v46 = vld [vmem:[%s4587_s6 + $0x78] ss:$12 sps:$4 sm:$0xff]  }
 0x15e   : > { %1440 = vmatprep.subr.bf16.mxu0 %v3216_v48  ;;  %3005 = vmatprep.subr.bf16.mxu1 %v3217_v49  ;;  %v3287_v48 = vld [vmem:[%s4585_s4 + $0x2d4] ss:$12 sps:$4 sm:$0xff]  }
 0x15f   : > { %v3290_v49 = vld [vmem:[%s4587_s6 + $0x94] ss:$12 sps:$4 sm:$0xff]  }
 0x160   : > { %1441 = vmatpush1.bf16.msra.mxu0 %v3214_v51  ;;  %3006 = vmatpush3.bf16.msra.mxu1 %v3218_v52  ;;  %v3285_v51 = vld [vmem:[%s4585_s4 + $0x2d0] ss:$12 sps:$4 sm:$0xff]  }
 0x161   : > { %1442 = vmatprep.subr.bf16.mxu0 %v3221_v53  ;;  %3007 = vmatprep.subr.bf16.mxu1 %v3222_v54  ;;  %v3288_v52 = vld [vmem:[%s4587_s6 + $0x90] ss:$12 sps:$4 sm:$0xff]   ;;  %v3293_v53 = vld [vmem:[%s4585_s4 + $0x2ec] ss:$12 sps:$4 sm:$0xff]  }
 0x162   : > { %v3296_v54 = vld [vmem:[%s4587_s6 + $0xac] ss:$12 sps:$4 sm:$0xff]  }
 0x164   : > { %1443 = vmatpush1.bf16.msra.mxu0 %v3219_v55  ;;  %3008 = vmatpush3.bf16.msra.mxu1 %v3223_v56  ;;  %v3291_v55 = vld [vmem:[%s4585_s4 + $0x2e8] ss:$12 sps:$4 sm:$0xff]  }
 0x165   : > { %1444 = vmatprep.subr.bf16.mxu0 %v3226_v57  ;;  %3009 = vmatprep.subr.bf16.mxu1 %v3227_v58  ;;  %v3294_v56 = vld [vmem:[%s4587_s6 + $0xa8] ss:$12 sps:$4 sm:$0xff]   ;;  %v3299_v57 = vld [vmem:[%s4587_s6 + $0xc4] ss:$12 sps:$4 sm:$0xff]  }
 0x166   : > { %v3300_v58 = vld [vmem:[%s4587_s6 + $0xc8] ss:$12 sps:$4 sm:$0xff]  }
 0x168   : > { %1445 = vmatpush1.bf16.msra.mxu0 %v3224_v59  ;;  %3010 = vmatpush3.bf16.msra.mxu1 %v3228_v60  ;;  %v3297_v59 = vld [vmem:[%s4587_s6 + $0xc0] ss:$12 sps:$4 sm:$0xff]   ;;  %v3301_v60 = vld [vmem:[%s4587_s6 + $0x8] ss:$12 sps:$4 sm:$0xff]  }
 0x169   : > { %1446 = vmatprep.subr.bf16.mxu0 %v3231_v61  ;;  %3011 = vmatprep.subr.bf16.mxu1 %v3232_v62  ;;  %v3304_v61 = vld [vmem:[%s4587_s6 + $0xdc] ss:$12 sps:$4 sm:$0xff]   ;;  %v3305_v62 = vld [vmem:[%s4587_s6 + $0xe0] ss:$12 sps:$4 sm:$0xff]  }
 0x16c   : > { %1447 = vmatpush1.bf16.msra.mxu0 %v3229_v63  ;;  %3012 = vmatpush3.bf16.msra.mxu1 %v3233_v0  ;;  %v3302_v63 = vld [vmem:[%s4587_s6 + $0xd8] ss:$12 sps:$4 sm:$0xff]   ;;  %v3306_v0 = vld [vmem:[%s4587_s6 + $0x20] ss:$12 sps:$4 sm:$0xff]  }
 0x16d   : > { %1448 = vmatprep.subr.bf16.mxu0 %v3236_v2  ;;  %3013 = vmatprep.subr.bf16.mxu1 %v3237_v3  ;;  %v3309_v2 = vld [vmem:[%s4587_s6 + $0xf4] ss:$12 sps:$4 sm:$0xff]   ;;  %v3310_v3 = vld [vmem:[%s4587_s6 + $0xf8] ss:$12 sps:$4 sm:$0xff]  }
 0x170   : > { %1449 = vmatpush1.bf16.msra.mxu0 %v3234_v9  ;;  %3014 = vmatpush3.bf16.msra.mxu1 %v3238_v4  ;;  %v3307_v9 = vld [vmem:[%s4587_s6 + $0xf0] ss:$12 sps:$4 sm:$0xff]   ;;  %v3314_v4 = vld [vmem:[%s4587_s6 + $0x10c] ss:$12 sps:$4 sm:$0xff]  }
 0x171   : > { %1450 = vmatprep.subr.bf16.mxu0 %v3241_v6  ;;  %3015 = vmatprep.subr.bf16.mxu1 %v3242_v7  ;;  %v3312_v6 = vld [vmem:[%s4587_s6 + $0x108] ss:$12 sps:$4 sm:$0xff]   ;;  %v3316_v7 = vld [vmem:[%s4587_s6 + $0x50] ss:$12 sps:$4 sm:$0xff]  }
 0x174   : > { %1451 = vmatpush1.bf16.msra.mxu0 %v3239_v8  ;;  %3016 = vmatpush3.bf16.msra.mxu1 %v3243_v10  ;;  %v3319_v8 = vld [vmem:[%s4587_s6 + $0x124] ss:$12 sps:$4 sm:$0xff]   ;;  %v3320_v10 = vld [vmem:[%s4587_s6 + $0x128] ss:$12 sps:$4 sm:$0xff]  }
 0x175   : > { %1452 = vmatprep.subr.bf16.mxu0 %v3246_v12  ;;  %3017 = vmatprep.subr.bf16.mxu1 %v3247_v13  ;;  %v3321_v12 = vld [vmem:[%s4587_s6 + $0x68] ss:$12 sps:$4 sm:$0xff]  }
 0x176   : > { %v3324_v13 = vld [vmem:[%s4587_s6 + $0x13c] ss:$12 sps:$4 sm:$0xff]  }
 0x178   : > { %1453 = vmatpush1.bf16.msra.mxu0 %v3244_v14  ;;  %3018 = vmatpush3.bf16.msra.mxu1 %v3248_v15  ;;  %v3325_v14 = vld [vmem:[%s4587_s6 + $0x140] ss:$12 sps:$4 sm:$0xff]   ;;  %v3322_v15 = vld [vmem:[%s4587_s6 + $0x138] ss:$12 sps:$4 sm:$0xff]  }
 0x179   : > { %1454 = vmatprep.subr.bf16.mxu0 %v3251_v17  ;;  %2219 = vmatprep.subr.bf16.mxu1 %v3254_v18  ;;  %v3329_v17 = vld [vmem:[%s4587_s6 + $0x154] ss:$12 sps:$4 sm:$0xff]   ;;  %v3330_v18 = vld [vmem:[%s4587_s6 + $0x158] ss:$12 sps:$4 sm:$0xff]  }
 0x17b   : > { %1552 = vmatmul.mubr.bf16.vlgmr.msra.gmra.mrb[8].mxu1 %v4089_v24 }
 0x17c   : > { %1455 = vmatpush1.bf16.msra.mxu0 %v3249_v19  ;;  %2220 = vmatpush1.bf16.msra.mxu1 %v3252_v20  ;;  %v3327_v19 = vld [vmem:[%s4587_s6 + $0x150] ss:$12 sps:$4 sm:$0xff]   ;;  %v3331_v20 = vld [vmem:[%s4587_s6 + $0x98] ss:$12 sps:$4 sm:$0xff]  }
 0x17d   : > { %2251 = vmatprep.mubr.bf16.mxu1 %v3969_v44  ;;  %1456 = vmatprep.subr.bf16.mxu0 %v3257_v26  ;;  %v3334_v26 = vld [vmem:[%s4587_s6 + $0x16c] ss:$12 sps:$4 sm:$0xff]  }
 0x17e   : > { %2221 = vmatprep.subr.bf16.mxu1 %v3260_v27  ;;  %v3335_v27 = vld [vmem:[%s4587_s6 + $0x170] ss:$12 sps:$4 sm:$0xff]  }
 0x180   : > { %1457 = vmatpush1.bf16.msra.mxu0 %v3255_v28  ;;  %2222 = vmatpush1.bf16.msra.mxu1 %v3258_v29  ;;  %v3332_v28 = vld [vmem:[%s4587_s6 + $0x168] ss:$12 sps:$4 sm:$0xff]   ;;  %v3336_v29 = vld [vmem:[%s4587_s6 + $0xb0] ss:$12 sps:$4 sm:$0xff]  }
 0x181   : > { %1458 = vmatprep.subr.bf16.mxu0 %v3263_v30  ;;  %2223 = vmatprep.subr.bf16.mxu1 %v3266_v31  ;;  %v3339_v30 = vld [vmem:[%s4587_s6 + $0x184] ss:$12 sps:$4 sm:$0xff]   ;;  %v3340_v31 = vld [vmem:[%s4587_s6 + $0x248] ss:$12 sps:$4 sm:$0xff]  }
 0x184   : > { %1459 = vmatpush1.bf16.msra.mxu0 %v3261_v32  ;;  %2224 = vmatpush1.bf16.msra.mxu1 %v3264_v33  ;;  %v3337_v32 = vld [vmem:[%s4587_s6 + $0x180] ss:$12 sps:$4 sm:$0xff]   ;;  %v3341_v33 = vld [vmem:[%s4587_s6 + $0x188] ss:$12 sps:$4 sm:$0xff]  }
 0x185   : > { %1460 = vmatprep.subr.bf16.mxu0 %v3269_v34  ;;  %2225 = vmatprep.subr.bf16.mxu1 %v3272_v35  ;;  %v3344_v34 = vld [vmem:[%s4587_s6 + $0x19c] ss:$12 sps:$4 sm:$0xff]   ;;  %v3345_v35 = vld [vmem:[%s4587_s6 + $0x260] ss:$12 sps:$4 sm:$0xff]  }
 0x188   : > { %1461 = vmatpush1.bf16.msra.mxu0 %v3267_v36  ;;  %2226 = vmatpush1.bf16.msra.mxu1 %v3270_v37  ;;  %v3342_v36 = vld [vmem:[%s4587_s6 + $0x198] ss:$12 sps:$4 sm:$0xff]   ;;  %v3346_v37 = vld [vmem:[%s4587_s6 + $0x1a0] ss:$12 sps:$4 sm:$0xff]  }
 0x189   : > { %1462 = vmatprep.subr.bf16.mxu0 %v3275_v38  ;;  %2227 = vmatprep.subr.bf16.mxu1 %v3278_v39  ;;  %v3349_v38 = vld [vmem:[%s4587_s6 + $0x1b4] ss:$12 sps:$4 sm:$0xff]   ;;  %v3347_v39 = vld [vmem:[%s4587_s6 + $0x1b0] ss:$12 sps:$4 sm:$0xff]  }
 0x18c   : > { %1463 = vmatpush1.bf16.msra.mxu0 %v3273_v40  ;;  %2228 = vmatpush1.bf16.msra.mxu1 %v3276_v41  ;;  %v3354_v40 = vld [vmem:[%s4587_s6 + $0x1cc] ss:$12 sps:$4 sm:$0xff]   ;;  %v3355_v41 = vld [vmem:[%s4587_s6 + $0x290] ss:$12 sps:$4 sm:$0xff]  }
 0x18d   : > { %1464 = vmatprep.subr.bf16.mxu0 %v3281_v42  ;;  %2229 = vmatprep.subr.bf16.mxu1 %v3284_v43  ;;  %v3352_v42 = vld [vmem:[%s4587_s6 + $0x1c8] ss:$12 sps:$4 sm:$0xff]   ;;  %v3356_v43 = vld [vmem:[%s4587_s6 + $0x1d0] ss:$12 sps:$4 sm:$0xff]  }
 0x190   : > { %1465 = vmatpush1.bf16.msra.mxu0 %v3279_v45  ;;  %2230 = vmatpush1.bf16.msra.mxu1 %v3282_v46  ;;  %v3359_v45 = vld [vmem:[%s4587_s6 + $0x1e4] ss:$12 sps:$4 sm:$0xff]   ;;  %v3360_v46 = vld [vmem:[%s4587_s6 + $0x2a8] ss:$12 sps:$4 sm:$0xff]  }
 0x191   : > { %1466 = vmatprep.subr.bf16.mxu0 %v3287_v48  ;;  %2231 = vmatprep.subr.bf16.mxu1 %v3290_v49  ;;  %v3357_v48 = vld [vmem:[%s4587_s6 + $0x1e0] ss:$12 sps:$4 sm:$0xff]   ;;  %v3361_v49 = vld [vmem:[%s4587_s6 + $0x1e8] ss:$12 sps:$4 sm:$0xff]  }
 0x194   : > { %1467 = vmatpush1.bf16.msra.mxu0 %v3285_v51  ;;  %2232 = vmatpush1.bf16.msra.mxu1 %v3288_v52  ;;  %v3364_v51 = vld [vmem:[%s4587_s6 + $0x1fc] ss:$12 sps:$4 sm:$0xff]   ;;  %v3365_v52 = vld [vmem:[%s4587_s6 + $0x2c0] ss:$12 sps:$4 sm:$0xff]  }
 0x195   : > { %1468 = vmatprep.subr.bf16.mxu0 %v3293_v53  ;;  %2233 = vmatprep.subr.bf16.mxu1 %v3296_v54  ;;  %v3362_v53 = vld [vmem:[%s4587_s6 + $0x1f8] ss:$12 sps:$4 sm:$0xff]   ;;  %v3366_v54 = vld [vmem:[%s4587_s6 + $0x200] ss:$12 sps:$4 sm:$0xff]  }
 0x198   : > { %1469 = vmatpush1.bf16.msra.mxu0 %v3291_v55  ;;  %2234 = vmatpush1.bf16.msra.mxu1 %v3294_v56  ;;  %v3369_v55 = vld [vmem:[%s4587_s6 + $0x214] ss:$12 sps:$4 sm:$0xff]   ;;  %v3370_v56 = vld [vmem:[%s4587_s6 + $0x2d8] ss:$12 sps:$4 sm:$0xff]  }
 0x199   : > { %2235 = vmatprep.subr.bf16.mxu1 %v3299_v57  ;;  %3025 = vmatprep.subr.bf16.mxu0 %v3300_v58  ;;  %v3367_v57 = vld [vmem:[%s4587_s6 + $0x210] ss:$12 sps:$4 sm:$0xff]   ;;  %v3371_v58 = vld [vmem:[%s4587_s6 + $0x218] ss:$12 sps:$4 sm:$0xff]  }
 0x19b   : > { %1471 = vmatmul.mubr.bf16.vlgmr.msra.gmra.mrb[4].mxu0 %v4089_v24 }
 0x19c   : > { %2236 = vmatpush1.bf16.msra.mxu1 %v3297_v59  ;;  %3026 = vmatpush3.bf16.msra.mxu0 %v3301_v60  ;;  %v3374_v59 = vld [vmem:[%s4587_s6 + $0x22c] ss:$12 sps:$4 sm:$0xff]   ;;  %v3375_v60 = vld [vmem:[%s4587_s6 + $0x2f0] ss:$12 sps:$4 sm:$0xff]  }
 0x19d   : > { %2333 = vmatprep.mubr.bf16.mxu0 %v3969_v44  ;;  %2237 = vmatprep.subr.bf16.mxu1 %v3304_v61  ;;  %v3311_v44 = vld [vmem:[%s4587_s6 + $0x38] ss:$12 sps:$4 sm:$0xff]   ;;  %v3372_v61 = vld [vmem:[%s4587_s6 + $0x228] ss:$12 sps:$4 sm:$0xff]  }
 0x19e   : > { %3027 = vmatprep.subr.bf16.mxu0 %v3305_v62  ;;  %v3376_v62 = vld [vmem:[%s4587_s6 + $0x230] ss:$12 sps:$4 sm:$0xff]  }
 0x1a0   : > { %2238 = vmatpush1.bf16.msra.mxu1 %v3302_v63  ;;  %3028 = vmatpush3.bf16.msra.mxu0 %v3306_v0  ;;  %v3379_v63 = vld [vmem:[%s4587_s6 + $0x244] ss:$12 sps:$4 sm:$0xff]   ;;  %v3377_v0 = vld [vmem:[%s4587_s6 + $0x240] ss:$12 sps:$4 sm:$0xff]  }
 0x1a1   : > { %2239 = vmatprep.subr.bf16.mxu1 %v3309_v2  ;;  %3029 = vmatprep.subr.bf16.mxu0 %v3310_v3  ;;  %v3382_v2 = vld [vmem:[%s4587_s6 + $0x25c] ss:$12 sps:$4 sm:$0xff]   ;;  %v3380_v3 = vld [vmem:[%s4587_s6 + $0x258] ss:$12 sps:$4 sm:$0xff]  }
 0x1a4   : > { %2240 = vmatpush1.bf16.msra.mxu1 %v3307_v9  ;;  %3030 = vmatpush3.bf16.msra.mxu0 %v3311_v44  ;;  %v3385_v9 = vld [vmem:[%s4587_s6 + $0x274] ss:$12 sps:$4 sm:$0xff]   ;;  %v3383_v44 = vld [vmem:[%s4587_s6 + $0x270] ss:$12 sps:$4 sm:$0xff]  }
 0x1a5   : > { %2241 = vmatprep.subr.bf16.mxu1 %v3314_v4  ;;  %3031 = vmatprep.subr.bf16.mxu0 %v3315_v5  ;;  %v3388_v4 = vld [vmem:[%s4587_s6 + $0x28c] ss:$12 sps:$4 sm:$0xff]   ;;  %v3386_v5 = vld [vmem:[%s4587_s6 + $0x288] ss:$12 sps:$4 sm:$0xff]  }
 0x1a8   : > { %2242 = vmatpush1.bf16.msra.mxu1 %v3312_v6  ;;  %3032 = vmatpush3.bf16.msra.mxu0 %v3316_v7  ;;  %v3391_v6 = vld [vmem:[%s4587_s6 + $0x2a4] ss:$12 sps:$4 sm:$0xff]   ;;  %v3389_v7 = vld [vmem:[%s4587_s6 + $0x2a0] ss:$12 sps:$4 sm:$0xff]  }
 0x1a9   : > { %2243 = vmatprep.subr.bf16.mxu1 %v3319_v8  ;;  %3033 = vmatprep.subr.bf16.mxu0 %v3320_v10  ;;  %v3394_v8 = vld [vmem:[%s4587_s6 + $0x2bc] ss:$12 sps:$4 sm:$0xff]   ;;  %v3392_v10 = vld [vmem:[%s4587_s6 + $0x2b8] ss:$12 sps:$4 sm:$0xff]  }
 0x1ac   : > { %2244 = vmatpush1.bf16.msra.mxu1 %v3317_v11  ;;  %3034 = vmatpush3.bf16.msra.mxu0 %v3321_v12  ;;  %v3397_v11 = vld [vmem:[%s4587_s6 + $0x2d4] ss:$12 sps:$4 sm:$0xff]   ;;  %v3395_v12 = vld [vmem:[%s4587_s6 + $0x2d0] ss:$12 sps:$4 sm:$0xff]  }
 0x1ad   : > { %2245 = vmatprep.subr.bf16.mxu1 %v3324_v13  ;;  %3035 = vmatprep.subr.bf16.mxu0 %v3325_v14  ;;  %v3400_v13 = vld [vmem:[%s4587_s6 + $0x2ec] ss:$12 sps:$4 sm:$0xff]   ;;  %v3398_v14 = vld [vmem:[%s4587_s6 + $0x2e8] ss:$12 sps:$4 sm:$0xff]  }
 0x1b0   : > { %2246 = vmatpush1.bf16.msra.mxu1 %v3322_v15  ;;  %3036 = vmatpush3.bf16.msra.mxu0 %v3326_v16 }
 0x1b1   : > { %2247 = vmatprep.subr.bf16.mxu1 %v3329_v17  ;;  %3037 = vmatprep.subr.bf16.mxu0 %v3330_v18 }
 0x1b4   : > { %2248 = vmatpush1.bf16.msra.mxu1 %v3327_v19  ;;  %3038 = vmatpush3.bf16.msra.mxu0 %v3331_v20  ;;  %v868_v20 = vld [vmem:[%s4586_s5] sm:$0x7] }
 0x1b5   : > { %2249 = vmatprep.subr.bf16.mxu1 %v3334_v26  ;;  %3039 = vmatprep.subr.bf16.mxu0 %v3335_v27  ;;  %v881_v26 = vrot.slane %v868_v20, %v4036_v1 }
 0x1b8   : > { %2250 = vmatpush1.bf16.msra.mxu1 %v3332_v28  ;;  %3040 = vmatpush3.bf16.msra.mxu0 %v3336_v29 }
 0x1b9   : > { %2260 = vmatprep.subr.bf16.mxu1 %v3339_v30  ;;  %3047 = vmatprep.subr.bf16.mxu0 %v3340_v31 }
 0x1bb   : > { %2252 = vmatmul.mubr.bf16.vlgmr.msra.gmra.mrb[12].mxu1 %v3977_v47  ;;  %2334 = vmatmul.mubr.bf16.vlgmr.msra.gmra.mrb[8].mxu0 %v3977_v47  ;;  %v3350_v47 = vld [vmem:[%s4587_s6 + $0x278] ss:$12 sps:$4 sm:$0xff]  }
 0x1bc   : > { %2261 = vmatpush1.bf16.msra.mxu1 %v3337_v32  ;;  %2292 = vmatprep.mubr.bf16.mxu1 %v3987_v50 }
 0x1bd   : > { %3048 = vmatpush3.bf16.msra.mxu0 %v3341_v33  ;;  %2373 = vmatprep.mubr.bf16.mxu0 %v3987_v50  ;;  %v3351_v50 = vld [vmem:[%s4587_s6 + $0x1b8] ss:$12 sps:$4 sm:$0xff]  }
 0x1be   : > { %2262 = vmatprep.subr.bf16.mxu1 %v3344_v34  ;;  %3049 = vmatprep.subr.bf16.mxu0 %v3345_v35 }
 0x1c0   : > { %2263 = vmatpush1.bf16.msra.mxu1 %v3342_v36 }
 0x1c1   : > { %3050 = vmatpush3.bf16.msra.mxu0 %v3346_v37  ;;  %2264 = vmatprep.subr.bf16.mxu1 %v3349_v38 }
 0x1c2   : > { %3051 = vmatprep.subr.bf16.mxu0 %v3350_v47  ;;  %v873_v47 = vrot.slane %v868_v20, %v3951_v23 }
 0x1c4   : > { %2265 = vmatpush1.bf16.msra.mxu1 %v3347_v39  ;;  %v877_v39 = vrot.slane %v868_v20, %v3959_v25 }
 0x1c5   : > { %3052 = vmatpush3.bf16.msra.mxu0 %v3351_v50  ;;  %2266 = vmatprep.subr.bf16.mxu1 %v3354_v40 }
 0x1c6   : > { %3053 = vmatprep.subr.bf16.mxu0 %v3355_v41 }
 0x1c8   : > { %2267 = vmatpush1.bf16.msra.mxu1 %v3352_v42 }
 0x1c9   : > { %3054 = vmatpush3.bf16.msra.mxu0 %v3356_v43  ;;  %2268 = vmatprep.subr.bf16.mxu1 %v3359_v45 }
 0x1ca   : > { %3055 = vmatprep.subr.bf16.mxu0 %v3360_v46 }
 0x1cc   : > { %2269 = vmatpush1.bf16.msra.mxu1 %v3357_v48 }
 0x1cd   : > { %3056 = vmatpush3.bf16.msra.mxu0 %v3361_v49  ;;  %2270 = vmatprep.subr.bf16.mxu1 %v3364_v51 }
 0x1ce   : > { %3057 = vmatprep.subr.bf16.mxu0 %v3365_v52 }
 0x1d0   : > { %2271 = vmatpush1.bf16.msra.mxu1 %v3362_v53 }
 0x1d1   : > { %3058 = vmatpush3.bf16.msra.mxu0 %v3366_v54  ;;  %2272 = vmatprep.subr.bf16.mxu1 %v3369_v55 }
 0x1d2   : > { %3059 = vmatprep.subr.bf16.mxu0 %v3370_v56 }
 0x1d4   : > { %2273 = vmatpush1.bf16.msra.mxu1 %v3367_v57 }
 0x1d5   : > { %3060 = vmatpush3.bf16.msra.mxu0 %v3371_v58  ;;  %2274 = vmatprep.subr.bf16.mxu1 %v3374_v59 }
 0x1d6   : > { %3061 = vmatprep.subr.bf16.mxu0 %v3375_v60 }
 0x1d8   : > { %2275 = vmatpush1.bf16.msra.mxu1 %v3372_v61 }
 0x1d9   : > { %3062 = vmatpush3.bf16.msra.mxu0 %v3376_v62  ;;  %2276 = vmatprep.subr.bf16.mxu1 %v3379_v63 }
 0x1dc   : > { %2374 = vmatmul.mubr.bf16.vlgmr.msra.gmra.mrb[12].mxu0 %v4089_v24  ;;  %2277 = vmatpush1.bf16.msra.mxu1 %v3377_v0 }
 0x1dd   : > { %2278 = vmatprep.subr.bf16.mxu1 %v3382_v2 }
 0x1e0   : > { %2279 = vmatpush1.bf16.msra.mxu1 %v3380_v3 }
 0x1e1   : > { %2280 = vmatprep.subr.bf16.mxu1 %v3385_v9 }
 0x1e4   : > { %2281 = vmatpush1.bf16.msra.mxu1 %v3383_v44 }
 0x1e5   : > { %2282 = vmatprep.subr.bf16.mxu1 %v3388_v4 }
 0x1e8   : > { %2283 = vmatpush1.bf16.msra.mxu1 %v3386_v5 }
 0x1e9   : > { %2284 = vmatprep.subr.bf16.mxu1 %v3391_v6 }
 0x1ec   : > { %2285 = vmatpush1.bf16.msra.mxu1 %v3389_v7 }
 0x1ed   : > { %2286 = vmatprep.subr.bf16.mxu1 %v3394_v8 }
 0x1f0   : > { %2287 = vmatpush1.bf16.msra.mxu1 %v3392_v10 }
 0x1f1   : > { %2288 = vmatprep.subr.bf16.mxu1 %v3397_v11 }
 0x1f4   : > { %2289 = vmatpush1.bf16.msra.mxu1 %v3395_v12 }
 0x1f5   : > { %2290 = vmatprep.subr.bf16.mxu1 %v3400_v13 }
 0x1f8   : > { %2291 = vmatpush1.bf16.msra.mxu1 %v3398_v14 }
 0x1fb   : > { %2293 = vmatmul.mubr.bf16.vlgmr.msra.gmra.mrb[12].mxu1 %v4089_v24 }
 0x22e   : > { %v2997_v15 = vpop.f32.mrb[4].mxu1 }
 0x22f   : > { %v2998_v16 = vpop.f32.mrb[5].mxu1 }
 0x230   : > { %v2999_v17 = vadd.f32 %v2998_v16, %v2997_v15  ;;  %v3000_v18 = vpop.f32.mrb[6].mxu1 }
 0x231   : > { %v3001_v19 = vpop.f32.mrb[7].mxu1 }
 0x232   : > { %v1514_v29 = vadd.f32 %v2999_v17, %v881_v26 }
 0x24e   : > { %v3019_v27 = vpop.f32.mrb[8].mxu1 }
 0x24f   : > { %v3020_v28 = vpop.f32.mrb[9].mxu1 }
 0x250   : > { %v3021_v30 = vadd.f32 %v3020_v28, %v3019_v27  ;;  %v3022_v31 = vpop.f32.mrb[10].mxu1 }
 0x251   : > { %v3023_v32 = vpop.f32.mrb[11].mxu1 }
 0x252   : > { %v1554_v33 = vadd.f32 %v3021_v30, %v1514_v29 }
 0x254   : > { %3471 = vtanh.f32 %v1554_v33 }
 0x25e   : > { %v3472_v24 = vpop.eup %3471 }
 0x25f   : > { %v2397_v34 = vsel %vm2396_vm2, %v3472_v24, -inf  ;;  %2577 = vst.msk [vmem:[%s4436_s18 + $0x8] sm:$0xf] %vm2396_vm2, %v3472_v24 }
 0x260   : > { %v2398_v35 = vrot.slane %v2397_v34, 4 }
 0x262   : > { %v2399_v36 = vmax.f32 %v2397_v34, %v2398_v35 }
 0x264   : > { %v2400_v37 = vrot.slane %v2399_v36, 2 }
 0x266   : > { %v2401_v38 = vmax.f32 %v2399_v36, %v2400_v37 }
 0x268   : > { %v2402_v40 = vrot.slane %v2401_v38, 1 }
 0x26a   : > { %v2403_v48 = vmax.f32 %v2401_v38, %v2402_v40 }
 0x26c   : > { %v2406_v49 = vsub.f32 %v3472_v24, %v2403_v48 }
 0x26e   : > { %v1472_v50 = vpop.f32.mrb[4].mxu0  ;;  %v2411_v51 = vmul.f32 1.442695, %v2406_v49 }
 0x26f   : > { %v3069_v41 = vadd.f32 %v1472_v50, %v873_v47  ;;  %v1474_v42 = vpop.f32.mrb[5].mxu0 }
 0x270   : > { %v3070_v43 = vadd.f32 %v1474_v42, %v877_v39  ;;  %v1476_v45 = vpop.f32.mrb[6].mxu0 }
 0x271   : > { %3473 = vtanh.f32 %v3069_v41  ;;  %v1477_v46 = vpop.f32.mrb[7].mxu0 }
 0x272   : > { %3475 = vtanh.f32 %v3070_v43 }
 0x273   : > { %3477 = vpow2.f32 %v2411_v51 }
 0x27b   : > { %v3474_v52 = vpop.eup %3473 }
 0x27c   : > { %v3476_v53 = vpop.eup %3475  ;;  %v2382_v54 = vsel %vm2381_vm3, %v3474_v52, -inf }
 0x27d   : > { %v2383_v55 = vrot.slane %v2382_v54, 4  ;;  %v2389_v56 = vsel %vm2381_vm3, %v3476_v53, -inf  ;;  %v2574_v57 = vcombine.low %v3474_v52, %v3476_v53 }
 0x27e   : > { %v2390_v58 = vrot.slane %v2389_v56, 4 }
 0x27f   : > { %v2384_v59 = vmax.f32 %v2382_v54, %v2383_v55  ;;  %2576 = vst [vmem:[%s4436_s18] sm:$0xff] %v2574_v57  ;;  %s3505_s18 = sshll.u32 %s3598_s15, 4  ;;  %s3506_s18 = int_to_ptr.vmem [resolvable:$false] %s3505_s18 }
 0x280   : > { %v2391_v60 = vmax.f32 %v2389_v56, %v2390_v58  ;;  %s3507_s17 = scalar_lea.vmem %s3506_s18, 384  ;;  %p3508_p0 = scmp.lt.s32.totalorder %s4454_s25, %s3506_s18 }
 0x281   : > { %v2385_v61 = vrot.slane %v2384_v59, 2  ;;  %p3509_p1 = scmp.lt.s32.totalorder %s3507_s17, %s3501_s27 }
 0x282   : > { %v2392_v62 = vrot.slane %v2391_v60, 2 }
 0x283   : > { %v2386_v63 = vmax.f32 %v2384_v59, %v2385_v61  ;;  %p3510_p2 = por %p3509_p1, %p3508_p0 }
 0x285   : > { %p3511_p3 = pnand %p3510_p2, %p3504_p13 }
 0x287   : > { %3514 = shalt.err (!%p3511_p3)
}
 0x288   : > { %s3515_s26 = scalar_lea.hbm %s4452_s30, 192  ;;  %s3519_s15 = scalar_lea.hbm %s4592_s11, 384 }
 0x289   : > { %p3516_p4 = scmp.ne.s32.totalorder %s4452_s30, %s3515_s26  ;;  %p3520_p9 = scmp.lt.u32.totalorder %s4452_s30, %s4592_s11 }
 0x28a   : > { %p3521_p10 = scmp.lt.u32.totalorder %s3519_s15, %s3515_s26  ;;  %p3523_p12 = scmp.lt.u32.totalorder %s3515_s26, %s4452_s30 }
 0x28b   : > { %p3517_p7 = pnand %p3516_p4, %p3702_p5 }
 0x28c   : > { %p3522_p11 = por %p3521_p10, %p3520_p9 }
 0x28d   : > { %p3518_p8 = pneg %p3517_p7 }
 0x28e   : > { %p3524_p13 = por %p3523_p12, %p3522_p11 }
 0x290   : > { %p3525_p0 = pnand %p3524_p13, %p3518_p8 }
 0x292   : > { %3528 = shalt.err (!%p3525_p0)
}
 0x293   : > { %3088 = dma.vmem_to_hbm [thread:$0]  (%p3702_p5), %s4454_s25, 192, %s4452_s30, %s2592_s13   ;;  %v2393_v0 = vmax.f32 %v2391_v60, %v2392_v62  ;;  %v3478_v2 = vpop.eup %3477  ;;  %v2387_v3 = vrot.slane %v2386_v63, 1  ;;  %v3041_v4 = vpop.f32.mrb[8].mxu0  ;;  %v1690_v31 = vld [vmem:[%s4588_s7] sm:$0x7] }
 0x294   : > { %v2427_v9 = vsel %vm2396_vm2, %v3478_v2, 0.0  ;;  %v3042_v7 = vpop.f32.mrb[9].mxu0  ;;  %v1703_v24 = vrot.slane %v1690_v31, %v4036_v1  ;;  %s4600_s23 = smul.u32 12, %s4430_s16  ;;  %v1695_v59 = vrot.slane %v1690_v31, %v3951_v23  ;;  %v1699_v61 = vrot.slane %v1690_v31, %v3959_v25  ;;  %s3599_s18 = smov [#allocation3]  }
 0x295   : > { %v2394_v44 = vrot.slane %v2393_v0, 1  ;;  %v2428_v5 = vrot.slane %v2427_v9, 4  ;;  %v2388_v6 = vmax.f32 %v2386_v63, %v2387_v3  ;;  %v3043_v10 = vadd.f32 %v3042_v7, %v3041_v4  ;;  %v3044_v11 = vpop.f32.mrb[10].mxu0  ;;  %s4601_s13 = smul.u32 192, %s3685_s0  ;;  %s2587_s0 = scalar_lea.sflag [#allocation4], %s4430_s16 }
 0x296   : > { %v3045_v12 = vpop.f32.mrb[11].mxu0  ;;  %s4487_s25 = scalar_lea.vmem [#allocation3], %s4600_s23  ;;  %s3533_s1 = sshll.u32 %s3599_s18, 4  ;;  %s3534_s1 = int_to_ptr.vmem [resolvable:$false] %s3533_s1 }
 0x297   : > { %v2395_v8 = vmax.f32 %v2393_v0, %v2394_v44  ;;  %v2429_v13 = vadd.f32 %v2428_v5, %v2427_v9  ;;  %v2404_v14 = vsub.f32 %v3474_v52, %v2388_v6  ;;  %v2336_v47 = vadd.f32 %v3043_v10, %v1703_v24  ;;  %s2612_s30 = sshll.u32 %s4487_s25, 4  ;;  %s4508_s12 = scalar_lea.hbm %s4591_s10, %s4601_s13  ;;  %s4510_s30 = int_to_ptr.vmem [resolvable:$true] %s2612_s30 }
 0x298   : > { %s3529_s15 = scalar_lea.vmem %s4510_s30, 192  ;;  %s3535_s17 = scalar_lea.vmem %s3534_s1, 384 }
 0x299   : > { %v2405_v15 = vsub.f32 %v3476_v53, %v2395_v8  ;;  %v2430_v16 = vrot.slane %v2429_v13, 2  ;;  %v2407_v17 = vmul.f32 1.442695, %v2404_v14  ;;  %p3530_p1 = scmp.ne.s32.totalorder %s4510_s30, %s3529_s15  ;;  %p3536_p4 = scmp.lt.s32.totalorder %s4510_s30, %s3534_s1 }
 0x29a   : > { %p3537_p7 = scmp.lt.s32.totalorder %s3535_s17, %s3529_s15 }
 0x29b   : > { %v2409_v18 = vmul.f32 1.442695, %v2405_v15  ;;  %v2431_v19 = vadd.f32 %v2430_v16, %v2429_v13  ;;  %3479 = vpow2.f32 %v2407_v17  ;;  %p3531_p2 = pnand %p3530_p1, %p3702_p5 }
 0x29c   : > { %p3538_p8 = por %p3537_p7, %p3536_p4 }
 0x29d   : > { %3481 = vpow2.f32 %v2409_v18  ;;  %v2432_v20 = vrot.slane %v2431_v19, 1  ;;  %p3532_p3 = pneg %p3531_p2 }
 0x29f   : > { %v2433_v26 = vadd.f32 %v2432_v20, %v2431_v19  ;;  %p3539_p9 = pnand %p3538_p8, %p3532_p3 }
 0x2a1   : > { %3483 = vrcp.f32 %v2433_v26 }
 0x2a5   : > { %v3480_v27 = vpop.eup %3479 }
 0x2a6   : > { %v2413_v29 = vsel %vm2381_vm3, %v3480_v27, 0.0 }
 0x2a7   : > { %v3482_v28 = vpop.eup %3481  ;;  %v2414_v32 = vrot.slane %v2413_v29, 4 }
 0x2a8   : > { %v2420_v30 = vsel %vm2381_vm3, %v3482_v28, 0.0 }
 0x2a9   : > { %v2421_v33 = vrot.slane %v2420_v30, 4  ;;  %v2415_v34 = vadd.f32 %v2414_v32, %v2413_v29 }
 0x2ab   : > { %v2422_v36 = vadd.f32 %v2421_v33, %v2420_v30  ;;  %v3484_v37 = vpop.eup %3483  ;;  %v2416_v41 = vrot.slane %v2415_v34, 2 }
 0x2ac   : > { %v2439_v43 = vmul.f32 %v3484_v37, %v3478_v2 }
 0x2ad   : > { %v2423_v45 = vrot.slane %v2422_v36, 2  ;;  %v2417_v1 = vadd.f32 %v2416_v41, %v2415_v34 }
 0x2af   : > { %v3063_v35 = vpop.f32.mrb[12].mxu0  ;;  %v2424_v49 = vadd.f32 %v2423_v45, %v2422_v36  ;;  %v2418_v51 = vrot.slane %v2417_v1, 1 }
 0x2b0   : > { %v3064_v38 = vpop.f32.mrb[13].mxu0 }
 0x2b1   : > { %v3065_v39 = vadd.f32 %v3064_v38, %v3063_v35  ;;  %v3066_v50 = vpop.f32.mrb[14].mxu0  ;;  %v2425_v52 = vrot.slane %v2424_v49, 1  ;;  %v2419_v53 = vadd.f32 %v2418_v51, %v2417_v1 }
 0x2b2   : > { %v3067_v40 = vpop.f32.mrb[15].mxu0 }
 0x2b3   : > { %v2376_v42 = vadd.f32 %v3065_v39, %v2336_v47  ;;  %v2426_v54 = vadd.f32 %v2425_v52, %v2424_v49 }
 0x2b5   : > { %v2442_v46 = vmul.f32 %v2439_v43, %v2376_v42  ;;  %v2975_v48 = vmul.f32 -1.442695, %v2376_v42  ;;  %2571 = vst.msk [vmem:[%s4487_s25 + $0x8] sm:$0xf] %vm2396_vm2, %v2376_v42 }
 0x2b7   : > { %3485 = vpow2.f32 %v2975_v48  ;;  %v2457_v57 = vsel %vm2396_vm2, %v2442_v46, 0.0 }
 0x2b8   : > { %3487 = vrcp.f32 %v2419_v53  ;;  %v2458_v58 = vrot.slane %v2457_v57, 4 }
 0x2b9   : > { %3489 = vrcp.f32 %v2426_v54 }
 0x2ba   : > { %v2459_v2 = vadd.f32 %v2458_v58, %v2457_v57 }
 0x2bc   : > { %v2460_v13 = vrot.slane %v2459_v2, 2 }
 0x2c1   : > { %v3486_v55 = vpop.eup %3485 }
 0x2c2   : > { %v2507_v56 = vadd.f32 1.0, %v3486_v55  ;;  %v3488_v60 = vpop.eup %3487 }
 0x2c3   : > { %v3490_v62 = vpop.eup %3489  ;;  %v4496_v44 = vmul.f32 %v3488_v60, %v3480_v27 }
 0x2c4   : > { %3491 = vrcp.f32 %v2507_v56  ;;  %v4499_v6 = vmul.f32 %v3490_v62, %v3482_v28 }
 0x2ce   : > { %v3492_v63 = vpop.eup %3491  ;;  %v2294_v0 = vpop.f32.mrb[12].mxu1 }
 0x2cf   : > { %v4494_v3 = vmul.f32 %v3492_v63, %v2439_v43  ;;  %v3071_v9 = vadd.f32 %v2294_v0, %v1695_v59  ;;  %v2296_v4 = vpop.f32.mrb[13].mxu1 }
 0x2d0   : > { %v3072_v5 = vadd.f32 %v2296_v4, %v1699_v61  ;;  %v2298_v23 = vpop.f32.mrb[14].mxu1 }
 0x2d1   : > { %v2440_v7 = vmul.f32 %v3071_v9, %v4496_v44  ;;  %v2973_v25 = vmul.f32 -1.442695, %v3071_v9  ;;  %v2299_v8 = vpop.f32.mrb[15].mxu1 }
 0x2d2   : > { %v2441_v10 = vmul.f32 %v3072_v5, %v4499_v6  ;;  %v2974_v11 = vmul.f32 -1.442695, %v3072_v5  ;;  %v2568_v12 = vcombine.low %v3071_v9, %v3072_v5 }
 0x2d3   : > { %v2443_v14 = vsel %vm2381_vm3, %v2440_v7, 0.0  ;;  %3493 = vpow2.f32 %v2973_v25 }
 0x2d4   : > { %v2444_v15 = vrot.slane %v2443_v14, 4  ;;  %v2450_v16 = vsel %vm2381_vm3, %v2441_v10, 0.0  ;;  %3495 = vpow2.f32 %v2974_v11  ;;  %2570 = vst [vmem:[%s4487_s25] sm:$0xff] %v2568_v12 }
 0x2d5   : > { %v2451_v17 = vrot.slane %v2450_v16, 4 }
 0x2d6   : > { %3542 = shalt.err (!%p3539_p9)
}
 0x2d7   : > { %s3543_s16 = scalar_lea.hbm %s4508_s12, 192  ;;  %s3547_s13 = scalar_lea.hbm %s4591_s10, 384 }
 0x2d8   : > { %p3544_p10 = scmp.ne.s32.totalorder %s4508_s12, %s3543_s16  ;;  %p3548_p13 = scmp.lt.u32.totalorder %s4508_s12, %s4591_s10 }
 0x2d9   : > { %p3549_p0 = scmp.lt.u32.totalorder %s3547_s13, %s3543_s16  ;;  %p3551_p2 = scmp.lt.u32.totalorder %s3543_s16, %s4508_s12 }
 0x2da   : > { %p3545_p11 = pnand %p3544_p10, %p3702_p5 }
 0x2db   : > { %p3550_p1 = por %p3549_p0, %p3548_p13 }
 0x2dc   : > { %p3546_p12 = pneg %p3545_p11 }
 0x2dd   : > { %p3552_p3 = por %p3551_p2, %p3550_p1 }
 0x2df   : > { %p3553_p4 = pnand %p3552_p3, %p3546_p12 }
 0x2e1   : > { %3556 = shalt.err (!%p3553_p4)
}
 0x2e2   : > { %3087 = dma.vmem_to_hbm [thread:$0]  (%p3702_p5), %s4510_s30, 192, %s4508_s12, %s2587_s0   ;;  %v2445_v18 = vadd.f32 %v2444_v15, %v2443_v14  ;;  %v3600_v19 = vmov 1966171168   ;;  %v2461_v26 = vadd.f32 %v2460_v13, %v2459_v2  ;;  %v2452_v27 = vadd.f32 %v2451_v17, %v2450_v16  ;;  %v3494_v34 = vpop.eup %3493 }
 0x2e3   : > { %v2469_v20 = vunpack.c.l.s4 %v3600_v19  ;;  %v3496_v36 = vpop.eup %3495  ;;  %v2505_v38 = vadd.f32 1.0, %v3494_v34  ;;  %v2531_v42 = vsel %vm2396_vm2, %v4494_v3, 0.0  ;;  %s3082_s28 = smul.u32 3, %s3717_s14  ;;  %vm4542_vm4 = vcmp.lt.s32.totalorder %v586_v21, 264 }
 0x2e4   : > { %v2446_v28 = vrot.slane %v2445_v18, 2  ;;  %v2453_v29 = vrot.slane %v2452_v27, 2  ;;  %v2462_v32 = vrot.slane %v2461_v26, 1  ;;  %v2506_v40 = vadd.f32 1.0, %v3496_v36 }
 0x2e5   : > { %v2470_v31 = vunpack.c.0.s8 %v2469_v20  ;;  %3497 = vrcp.f32 %v2505_v38  ;;  %v2532_v46 = vrot.slane %v2531_v42, 4  ;;  %s412_s0 = scalar_lea.vmem %s4589_s8, %s3082_s28  ;;  %s416_s1 = scalar_lea.vmem %s4590_s9, %s3082_s28 }
 0x2e6   : > { %v2447_v30 = vadd.f32 %v2446_v28, %v2445_v18  ;;  %v2454_v33 = vadd.f32 %v2453_v29, %v2452_v27  ;;  %v2463_v39 = vadd.f32 %v2462_v32, %v2461_v26  ;;  %3499 = vrcp.f32 %v2506_v40 }
 0x2e7   : > { %v2473_v47 = vsub.s32 %v2470_v31, %v3948_v22  ;;  %v2533_v49 = vadd.f32 %v2532_v46, %v2531_v42 }
 0x2e8   : > { %v2448_v24 = vrot.slane %v2447_v30, 1  ;;  %v2455_v35 = vrot.slane %v2454_v33, 1 }
 0x2e9   : > { %v2481_v43 = vrot.slane %v2463_v39, %v2473_v47  ;;  %v2534_v21 = vrot.slane %v2533_v49, 2 }
 0x2ea   : > { %v2449_v37 = vadd.f32 %v2448_v24, %v2447_v30  ;;  %v2456_v50 = vadd.f32 %v2455_v35, %v2454_v33 }
 0x2eb   : > { %v2535_v60 = vadd.f32 %v2534_v21, %v2533_v49 }
 0x2ec   : > { %v2467_v41 = vcombine.low %v2449_v37, %v2456_v50 }
 0x2ed   : > { %v2536_v2 = vrot.slane %v2535_v60, 1 }
 0x2ee   : > { %v2474_v45 = vrot.slane %v2467_v41, %v2473_v47 }
 0x2ef   : > { %v3498_v51 = vpop.eup %3497  ;;  %v2537_v5 = vadd.f32 %v2536_v2, %v2535_v60 }
 0x2f0   : > { %v2482_v48 = vcombine.low %v2474_v45, %v2481_v43  ;;  %v3500_v52 = vpop.eup %3499  ;;  %v2514_v53 = vmul.f32 %v3498_v51, %v4496_v44 }
 0x2f1   : > { %v2515_v54 = vmul.f32 %v3500_v52, %v4499_v6  ;;  %v2555_v7 = vrot.slane %v2537_v5, %v2473_v47 }
 0x2f2   : > { %v2489_v22 = vrot.slane %v2482_v48, %v2473_v47  ;;  %v2517_v55 = vsel %vm2381_vm3, %v2514_v53, 0.0 }
 0x2f3   : > { %v2518_v56 = vrot.slane %v2517_v55, 4  ;;  %v2524_v57 = vsel %vm2381_vm3, %v2515_v54, 0.0 }
 0x2f4   : > { %2495 = vst.msk [vmem:[%s412_s0] sm:$0x7] %vm4542_vm4, %v2489_v22  ;;  %v2525_v58 = vrot.slane %v2524_v57, 4 }
 0x2f5   : > { %v2519_v59 = vadd.f32 %v2518_v56, %v2517_v55 }
 0x2f6   : > { %v2526_v61 = vadd.f32 %v2525_v58, %v2524_v57 }
 0x2f7   : > { %v2520_v62 = vrot.slane %v2519_v59, 2 }
 0x2f8   : > { %v2527_v63 = vrot.slane %v2526_v61, 2 }
 0x2f9   : > { %v2521_v0 = vadd.f32 %v2520_v62, %v2519_v59 }
 0x2fa   : > { %v2528_v3 = vadd.f32 %v2527_v63, %v2526_v61 }
 0x2fb   : > { %v2522_v9 = vrot.slane %v2521_v0, 1 }
 0x2fc   : > { %v2529_v44 = vrot.slane %v2528_v3, 1 }
 0x2fd   : > { %v2523_v4 = vadd.f32 %v2522_v9, %v2521_v0 }
 0x2fe   : > { %v2530_v6 = vadd.f32 %v2529_v44, %v2528_v3 }
 0x300   : > { %v2541_v23 = vcombine.low %v2523_v4, %v2530_v6 }
 0x302   : > { %v2548_v25 = vrot.slane %v2541_v23, %v2473_v47 }
 0x304   : > { %v2556_v8 = vcombine.low %v2548_v25, %v2555_v7 }
 0x306   : > { %v2563_v10 = vrot.slane %v2556_v8, %v2473_v47 }
 0x308   : > { %2565 = vst.msk [vmem:[%s416_s1] sm:$0x7] %vm4542_vm4, %v2563_v10 }
 0x309 PF: > { %p3098_p5 = scmp.ge.s32.totalorder %s3595_s22, 2  ;;  %s2652_s17 = sand.u32 1, %s3583_s19  }
 0x30a   : > { %s2653_s16 = scalar_lea.sflag [#allocation4], %s2652_s17 }
 0x30b   : > { %p3092_p7 = pnand %p3098_p5, %p3706_p6 }
 0x30d   : > { %3574 = dma.done.wait (!%p3092_p7), %s2653_s16, 192  }
 0x30e   : > { %3576 = vsyncadd (!%p3092_p7), %s2653_s16, 4294967104  ;;  %s2662_s14 = scalar_lea.sflag [#allocation6], %s2652_s17 }
 0x30f   : > { %3578 = dma.done.wait (!%p3092_p7), %s2662_s14, 192  }
 0x310   : > { %3580 = vsyncadd (!%p3092_p7), %s2662_s14, 4294967104  ;;  %s4604_s23 = sld [smem:[#allocation9_spill]]  ;;  %p26_p8 = scmp.ge.s32.totalorder %s3689_s24, 4  }
 0x311   : > { %s4605_s19 = smov %s3587_s20  ;;  %s4606_s20 = smov %s3591_s21 }
 0x312   : > { %s4608_s22 = smov %s3689_s24  ;;  %28 = sbr.rel (!%p26_p8) target bundleno = 8 (0x8), region = 128 }
 0x316   : > { %s4607_s21 = smov %s4604_s23 }
 0x319   :  { %2667 = vsyncpa [#allocation4], 1 }
 0x31a   :  { %2669 = vsyncpa [#allocation4 + $0x1], 1 }
 0x31b   :  { %2670 = vsyncpa [#allocation6], 1 }
 0x31c   :  { %2672 = vsyncpa [#allocation6 + $0x1], 1 }

</bundles_post_ra>
